<compile_context>
chip_gen: v5e
topology: v5e:2x2
jax: 0.10.0
libtpu: 0.0.40
codegen_flags: <defaults>
</compile_context>

<pallas_src>
import math

import jax
import jax.numpy as jnp
import numpy as np
from jax.experimental import pallas as pl
from jax.experimental.pallas import tpu as pltpu


def _softmax_lastdim(z):
    z = z - jnp.max(z, axis=-1, keepdims=True)
    e = jnp.exp(z)
    return e / jnp.sum(e, axis=-1, keepdims=True)


def _outer3_attention_kernel(bil_ref, s1_ref, s2_ref, ctx_ref, out_ref):
    # bil_ref: (c, x, y)  shared bilinear parameter (same block every grid step)
    # s1_ref : (E, a, x)  block of E examples of sequence 1
    # s2_ref : (E, b, y)  block of E examples of sequence 2
    # ctx_ref: (E, c)     per-example context vectors
    # out_ref: (E, x+y)   [att1_x | att2_y] per example
    s1 = s1_ref[...]
    s2 = s2_ref[...]
    ctx = ctx_ref[...]

    e_blk = s1.shape[0]
    c = bil_ref.shape[0]
    x = s1.shape[-1]
    y = s2.shape[-1]

    # Linearity: sum over the *other* sequence before the bilinear contraction.
    s1sum = jnp.sum(s1, axis=1)          # (E, x) = sum_a seq1[a, :]
    s2sum = jnp.sum(s2, axis=1)          # (E, y) = sum_b seq2[b, :]

    # u[e] = W_e @ s2sum_e,  v[e] = s1sum_e @ W_e,  with W_e = sum_c ctx[e,c] bil[c].
    # c is tiny and static -> unrolled scalar-weighted FMAs over plain 2-D matmuls.
    u = jnp.zeros((e_blk, x), jnp.float32)
    v = jnp.zeros((e_blk, y), jnp.float32)
    for ci in range(c):
        w_c = bil_ref[ci]                                  # (x, y)
        ctx_c = ctx[:, ci:ci + 1]                          # (E, 1)
        # s2sum @ w_c^T -> (E, x)
        u = u + ctx_c * jax.lax.dot_general(
            s2sum, w_c, (((1,), (1,)), ((), ())),
            preferred_element_type=jnp.float32)
        # s1sum @ w_c -> (E, y)
        v = v + ctx_c * jnp.dot(
            s1sum, w_c, preferred_element_type=jnp.float32)

    # Marginal attention logits (== outer_ab.sum(1) / outer_ab.sum(0)).
    logits_a = jnp.sum(s1 * u[:, None, :], axis=2)         # (E, a)
    logits_b = jnp.sum(s2 * v[:, None, :], axis=2)         # (E, b)

    attn_a = _softmax_lastdim(logits_a)                    # (E, a)
    attn_b = _softmax_lastdim(logits_b)                    # (E, b)

    # Attended embeddings.
    out1 = jnp.sum(attn_a[:, :, None] * s1, axis=1)        # (E, x)
    out2 = jnp.sum(attn_b[:, :, None] * s2, axis=1)        # (E, y)

    out_ref[...] = jnp.concatenate([out1, out2], axis=-1)  # (E, x+y)


def _as_f32(t):
    t = jnp.asarray(t)
    return t if t.dtype == jnp.float32 else t.astype(jnp.float32)


def outer3_attention_batched(bilinear_cxy, seq1_bax, seq2_bby, context_bc,
                             *, block_b=8):
    """Batched Outer3Attention forward. Returns (att1 (B,x), att2 (B,y))."""
    assert block_b % 8 == 0, block_b
    bilinear_cxy = _as_f32(bilinear_cxy)
    seq1_bax = _as_f32(seq1_bax)
    seq2_bby = _as_f32(seq2_bby)
    context_bc = _as_f32(context_bc)

    c, x, y = bilinear_cxy.shape
    B, a, x2 = seq1_bax.shape
    _, b, y2 = seq2_bby.shape
    assert x2 == x and y2 == y and context_bc.shape == (B, c)

    # Pad batch to a multiple of the batch block (zero rows are harmless:
    # zero logits -> uniform softmax over zero rows -> zero output, discarded).
    bp = ((B + block_b - 1) // block_b) * block_b
    if bp != B:
        pad = bp - B
        seq1_bax = jnp.pad(seq1_bax, ((0, pad), (0, 0), (0, 0)))
        seq2_bby = jnp.pad(seq2_bby, ((0, pad), (0, 0), (0, 0)))
        context_bc = jnp.pad(context_bc, ((0, pad), (0, 0)))

    out = pl.pallas_call(
        _outer3_attention_kernel,
        out_shape=jax.ShapeDtypeStruct((bp, x + y), jnp.float32),
        grid_spec=pltpu.PrefetchScalarGridSpec(
            num_scalar_prefetch=0,
            grid=(bp // block_b,),
            in_specs=[
                pl.BlockSpec((c, x, y), lambda i: (0, 0, 0)),        # shared weights
                pl.BlockSpec((block_b, a, x), lambda i: (i, 0, 0)),  # seq1 block
                pl.BlockSpec((block_b, b, y), lambda i: (i, 0, 0)),  # seq2 block
                pl.BlockSpec((block_b, c), lambda i: (i, 0)),        # context block
            ],
            out_specs=pl.BlockSpec((block_b, x + y), lambda i: (i, 0)),
        ),
        compiler_params=pltpu.CompilerParams(
            dimension_semantics=("parallel",)),   # batch axis shards across TCs (v7x)
    )(bilinear_cxy, seq1_bax, seq2_bby, context_bc)

    return out[:B, :x], out[:B, x:]


def outer3_attention(bilinear_cxy, seq1_ax, seq2_by, context_c=None):
    """Single-example forward matching the nn.Module signature."""
    c = bilinear_cxy.shape[0]
    if context_c is None:
        assert c == 1, c
        context_c = jnp.ones((1,), jnp.float32)   # squeeze(2) == contract with [1.0]
    att1, att2 = outer3_attention_batched(
        bilinear_cxy, jnp.asarray(seq1_ax)[None], jnp.asarray(seq2_by)[None],
        jnp.asarray(context_c)[None])
    return att1[0], att2[0]


def _reference(bilinear_cxy, seq1_ax, seq2_by, context_c=None):
    """Pure-JAX transcription of the PyTorch forward (for verification)."""
    prod_cxb = jnp.matmul(bilinear_cxy, seq2_by.T)          # (c, x, b)
    prod_cbx = jnp.transpose(prod_cxb, (0, 2, 1))           # (c, b, x)
    outer_cba = jnp.matmul(prod_cbx, seq1_ax.T)             # (c, b, a)
    outer_abc = jnp.transpose(outer_cba, (2, 1, 0))         # (a, b, c)
    if context_c is None:
        outer_ab = outer_abc[..., 0]
    else:
        outer_ab = jnp.matmul(outer_abc, context_c)         # (a, b)
    logits_a = outer_ab.sum(1)
    logits_b = outer_ab.sum(0)
    att1 = seq1_ax.T @ jax.nn.softmax(logits_a)
    att2 = seq2_by.T @ jax.nn.softmax(logits_b)
    return att1, att2


if __name__ == "__main__":
    # a = seq1 len, b = seq2 len, x = seq1 embed, y = seq2 embed, c = context size.
    a, b, x, y, c = 8, 10, 32, 48, 4
    B = 16   # batch of examples sharing the bilinear parameter

    key = jax.random.PRNGKey(0)
    k_bil, k_s1, k_s2, k_ctx = jax.random.split(key, 4)

    # Parameter init mirroring reset_parameters(): uniform(-stdv, stdv), stdv=1/sqrt(x).
    stdv = 1.0 / math.sqrt(x)
    bilinear_cxy = jax.random.uniform(
        k_bil, (c, x, y), dtype=jnp.float32, minval=-stdv, maxval=stdv)

    seq1_bax = jax.random.normal(k_s1, (B, a, x), dtype=jnp.float32)
    seq2_bby = jax.random.normal(k_s2, (B, b, y), dtype=jnp.float32)
    context_bc = jax.random.normal(k_ctx, (B, c), dtype=jnp.float32)

    # Batched path (one pallas_call, grid over batch blocks).
    att1, att2 = outer3_attention_batched(bilinear_cxy, seq1_bax, seq2_bby, context_bc)
    jax.block_until_ready((att1, att2))
    assert att1.shape == (B, x) and att2.shape == (B, y)

    ref1, ref2 = jax.vmap(_reference, in_axes=(None, 0, 0, 0))(
        bilinear_cxy, seq1_bax, seq2_bby, context_bc)
    np.testing.assert_allclose(np.asarray(att1), np.asarray(ref1), rtol=1e-4, atol=1e-4)
    np.testing.assert_allclose(np.asarray(att2), np.asarray(ref2), rtol=1e-4, atol=1e-4)

    # Single-example path (matches the nn.Module call signature).
    a1, a2 = outer3_attention(bilinear_cxy, seq1_bax[0], seq2_bby[0], context_bc[0])
    jax.block_until_ready((a1, a2))
    r1, r2 = _reference(bilinear_cxy, seq1_bax[0], seq2_bby[0], context_bc[0])
    assert a1.shape == (x,) and a2.shape == (y,)
    np.testing.assert_allclose(np.asarray(a1), np.asarray(r1), rtol=1e-4, atol=1e-4)
    np.testing.assert_allclose(np.asarray(a2), np.asarray(r2), rtol=1e-4, atol=1e-4)

    print("KERNEL_OK")
</pallas_src>

<mosaic_0001>
module attributes {stable_mosaic.version = 11 : i64} {
  func.func @_outer3_attention_kernel(%arg0: i32, %arg1: memref<4x32x48xf32, #tpu.memory_space<vmem>>, %arg2: memref<8x8x32xf32, #tpu.memory_space<vmem>>, %arg3: memref<8x10x48xf32, #tpu.memory_space<vmem>>, %arg4: memref<8x4xf32, #tpu.memory_space<vmem>>, %arg5: memref<8x80xf32, #tpu.memory_space<vmem>>) attributes {dimension_semantics = [#tpu.dimension_semantics<parallel>], iteration_bounds = array<i64: 2>, scalar_prefetch = 0 : i64, scratch_operands = 0 : i64, tpu.core_type = #tpu.core_type<tc>, window_params = [{pipeline_mode = #tpu.pipeline_mode<synchronous>, transform_indices = @transform_0, window_bounds = array<i64: 4, 32, 48>}, {transform_indices = @transform_1, window_bounds = array<i64: 8, 8, 32>}, {transform_indices = @transform_2, window_bounds = array<i64: 8, 10, 48>}, {transform_indices = @transform_3, window_bounds = array<i64: 8, 4>}, {transform_indices = @transform_4, window_bounds = array<i64: 8, 80>}]} {
    %c0 = arith.constant 0 : index
    %c0_0 = arith.constant 0 : index
    %c0_1 = arith.constant 0 : index
    %0 = vector.load %arg2[%c0, %c0_0, %c0_1] : memref<8x8x32xf32, #tpu.memory_space<vmem>>, vector<8x8x32xf32>
    %c0_2 = arith.constant 0 : index
    %c0_3 = arith.constant 0 : index
    %c0_4 = arith.constant 0 : index
    %1 = vector.load %arg3[%c0_2, %c0_3, %c0_4] : memref<8x10x48xf32, #tpu.memory_space<vmem>>, vector<8x10x48xf32>
    %c0_5 = arith.constant 0 : index
    %c0_6 = arith.constant 0 : index
    %2 = vector.load %arg4[%c0_5, %c0_6] : memref<8x4xf32, #tpu.memory_space<vmem>>, vector<8x4xf32>
    %cst = arith.constant dense<0.000000e+00> : vector<8x32xf32>
    %3 = vector.multi_reduction <add>, %0, %cst [1] : vector<8x8x32xf32> to vector<8x32xf32>
    %cst_7 = arith.constant dense<0.000000e+00> : vector<8x48xf32>
    %4 = vector.multi_reduction <add>, %1, %cst_7 [1] : vector<8x10x48xf32> to vector<8x48xf32>
    %cst_8 = arith.constant 0.000000e+00 : f32
    %5 = vector.broadcast %cst_8 : f32 to vector<8x32xf32>
    %cst_9 = arith.constant 0.000000e+00 : f32
    %6 = vector.broadcast %cst_9 : f32 to vector<8x48xf32>
    %c0_10 = arith.constant 0 : index
    %c0_11 = arith.constant 0 : index
    %c0_12 = arith.constant 0 : index
    %7 = vector.load %arg1[%c0_10, %c0_11, %c0_12] : memref<4x32x48xf32, #tpu.memory_space<vmem>>, vector<1x32x48xf32>
    %8 = vector.shape_cast %7 : vector<1x32x48xf32> to vector<32x48xf32>
    %9 = vector.extract_strided_slice %2 {offsets = [0, 0], sizes = [8, 1], strides = [1, 1]} : vector<8x4xf32> to vector<8x1xf32>
    %cst_13 = arith.constant dense<0.000000e+00> : vector<8x32xf32>
    %10 = tpu.matmul %4, %8, %cst_13 {dimension_numbers = #tpu.dot_dimension_numbers<[1], [1], [0], [0], [0, 0, 1, 0], [], []>} : vector<8x48xf32>, vector<32x48xf32>, vector<8x32xf32> -> vector<8x32xf32>
    %11 = vector.broadcast %9 : vector<8x1xf32> to vector<8x32xf32>
    %12 = arith.mulf %11, %10 : vector<8x32xf32>
    %13 = arith.addf %5, %12 : vector<8x32xf32>
    %cst_14 = arith.constant dense<0.000000e+00> : vector<8x48xf32>
    %14 = tpu.matmul %3, %8, %cst_14 {dimension_numbers = #tpu.dot_dimension_numbers<[1], [0], [0], [1], [0, 0, 1, 1], [], []>} : vector<8x32xf32>, vector<32x48xf32>, vector<8x48xf32> -> vector<8x48xf32>
    %15 = vector.broadcast %9 : vector<8x1xf32> to vector<8x48xf32>
    %16 = arith.mulf %15, %14 : vector<8x48xf32>
    %17 = arith.addf %6, %16 : vector<8x48xf32>
    %c1 = arith.constant 1 : index
    %c0_15 = arith.constant 0 : index
    %c0_16 = arith.constant 0 : index
    %18 = vector.load %arg1[%c1, %c0_15, %c0_16] : memref<4x32x48xf32, #tpu.memory_space<vmem>>, vector<1x32x48xf32>
    %19 = vector.shape_cast %18 : vector<1x32x48xf32> to vector<32x48xf32>
    %20 = vector.extract_strided_slice %2 {offsets = [0, 1], sizes = [8, 1], strides = [1, 1]} : vector<8x4xf32> to vector<8x1xf32>
    %cst_17 = arith.constant dense<0.000000e+00> : vector<8x32xf32>
    %21 = tpu.matmul %4, %19, %cst_17 {dimension_numbers = #tpu.dot_dimension_numbers<[1], [1], [0], [0], [0, 0, 1, 0], [], []>} : vector<8x48xf32>, vector<32x48xf32>, vector<8x32xf32> -> vector<8x32xf32>
    %22 = vector.broadcast %20 : vector<8x1xf32> to vector<8x32xf32>
    %23 = arith.mulf %22, %21 : vector<8x32xf32>
    %24 = arith.addf %13, %23 : vector<8x32xf32>
    %cst_18 = arith.constant dense<0.000000e+00> : vector<8x48xf32>
    %25 = tpu.matmul %3, %19, %cst_18 {dimension_numbers = #tpu.dot_dimension_numbers<[1], [0], [0], [1], [0, 0, 1, 1], [], []>} : vector<8x32xf32>, vector<32x48xf32>, vector<8x48xf32> -> vector<8x48xf32>
    %26 = vector.broadcast %20 : vector<8x1xf32> to vector<8x48xf32>
    %27 = arith.mulf %26, %25 : vector<8x48xf32>
    %28 = arith.addf %17, %27 : vector<8x48xf32>
    %c2 = arith.constant 2 : index
    %c0_19 = arith.constant 0 : index
    %c0_20 = arith.constant 0 : index
    %29 = vector.load %arg1[%c2, %c0_19, %c0_20] : memref<4x32x48xf32, #tpu.memory_space<vmem>>, vector<1x32x48xf32>
    %30 = vector.shape_cast %29 : vector<1x32x48xf32> to vector<32x48xf32>
    %31 = vector.extract_strided_slice %2 {offsets = [0, 2], sizes = [8, 1], strides = [1, 1]} : vector<8x4xf32> to vector<8x1xf32>
    %cst_21 = arith.constant dense<0.000000e+00> : vector<8x32xf32>
    %32 = tpu.matmul %4, %30, %cst_21 {dimension_numbers = #tpu.dot_dimension_numbers<[1], [1], [0], [0], [0, 0, 1, 0], [], []>} : vector<8x48xf32>, vector<32x48xf32>, vector<8x32xf32> -> vector<8x32xf32>
    %33 = vector.broadcast %31 : vector<8x1xf32> to vector<8x32xf32>
    %34 = arith.mulf %33, %32 : vector<8x32xf32>
    %35 = arith.addf %24, %34 : vector<8x32xf32>
    %cst_22 = arith.constant dense<0.000000e+00> : vector<8x48xf32>
    %36 = tpu.matmul %3, %30, %cst_22 {dimension_numbers = #tpu.dot_dimension_numbers<[1], [0], [0], [1], [0, 0, 1, 1], [], []>} : vector<8x32xf32>, vector<32x48xf32>, vector<8x48xf32> -> vector<8x48xf32>
    %37 = vector.broadcast %31 : vector<8x1xf32> to vector<8x48xf32>
    %38 = arith.mulf %37, %36 : vector<8x48xf32>
    %39 = arith.addf %28, %38 : vector<8x48xf32>
    %c3 = arith.constant 3 : index
    %c0_23 = arith.constant 0 : index
    %c0_24 = arith.constant 0 : index
    %40 = vector.load %arg1[%c3, %c0_23, %c0_24] : memref<4x32x48xf32, #tpu.memory_space<vmem>>, vector<1x32x48xf32>
    %41 = vector.shape_cast %40 : vector<1x32x48xf32> to vector<32x48xf32>
    %42 = vector.extract_strided_slice %2 {offsets = [0, 3], sizes = [8, 1], strides = [1, 1]} : vector<8x4xf32> to vector<8x1xf32>
    %cst_25 = arith.constant dense<0.000000e+00> : vector<8x32xf32>
    %43 = tpu.matmul %4, %41, %cst_25 {dimension_numbers = #tpu.dot_dimension_numbers<[1], [1], [0], [0], [0, 0, 1, 0], [], []>} : vector<8x48xf32>, vector<32x48xf32>, vector<8x32xf32> -> vector<8x32xf32>
    %44 = vector.broadcast %42 : vector<8x1xf32> to vector<8x32xf32>
    %45 = arith.mulf %44, %43 : vector<8x32xf32>
    %46 = arith.addf %35, %45 : vector<8x32xf32>
    %cst_26 = arith.constant dense<0.000000e+00> : vector<8x48xf32>
    %47 = tpu.matmul %3, %41, %cst_26 {dimension_numbers = #tpu.dot_dimension_numbers<[1], [0], [0], [1], [0, 0, 1, 1], [], []>} : vector<8x32xf32>, vector<32x48xf32>, vector<8x48xf32> -> vector<8x48xf32>
    %48 = vector.broadcast %42 : vector<8x1xf32> to vector<8x48xf32>
    %49 = arith.mulf %48, %47 : vector<8x48xf32>
    %50 = arith.addf %39, %49 : vector<8x48xf32>
    %51 = vector.shape_cast %46 : vector<8x32xf32> to vector<8x1x32xf32>
    %52 = vector.broadcast %51 : vector<8x1x32xf32> to vector<8x8x32xf32>
    %53 = arith.mulf %0, %52 : vector<8x8x32xf32>
    %cst_27 = arith.constant dense<0.000000e+00> : vector<8x8xf32>
    %54 = vector.multi_reduction <add>, %53, %cst_27 [2] : vector<8x8x32xf32> to vector<8x8xf32>
    %55 = vector.shape_cast %50 : vector<8x48xf32> to vector<8x1x48xf32>
    %56 = vector.broadcast %55 : vector<8x1x48xf32> to vector<8x10x48xf32>
    %57 = arith.mulf %1, %56 : vector<8x10x48xf32>
    %cst_28 = arith.constant dense<0.000000e+00> : vector<8x10xf32>
    %58 = vector.multi_reduction <add>, %57, %cst_28 [2] : vector<8x10x48xf32> to vector<8x10xf32>
    %cst_29 = arith.constant dense<0xFF800000> : vector<8xf32>
    %59 = vector.multi_reduction <maximumf>, %54, %cst_29 [1] : vector<8x8xf32> to vector<8xf32>
    %60 = vector.shape_cast %59 : vector<8xf32> to vector<8x1xf32>
    %61 = vector.broadcast %60 : vector<8x1xf32> to vector<8x8xf32>
    %62 = arith.subf %54, %61 : vector<8x8xf32>
    %63 = math.exp %62 : vector<8x8xf32>
    %cst_30 = arith.constant dense<0.000000e+00> : vector<8xf32>
    %64 = vector.multi_reduction <add>, %63, %cst_30 [1] : vector<8x8xf32> to vector<8xf32>
    %65 = vector.shape_cast %64 : vector<8xf32> to vector<8x1xf32>
    %66 = vector.broadcast %65 : vector<8x1xf32> to vector<8x8xf32>
    %67 = arith.divf %63, %66 : vector<8x8xf32>
    %cst_31 = arith.constant dense<0xFF800000> : vector<8xf32>
    %68 = vector.multi_reduction <maximumf>, %58, %cst_31 [1] : vector<8x10xf32> to vector<8xf32>
    %69 = vector.shape_cast %68 : vector<8xf32> to vector<8x1xf32>
    %70 = vector.broadcast %69 : vector<8x1xf32> to vector<8x10xf32>
    %71 = arith.subf %58, %70 : vector<8x10xf32>
    %72 = math.exp %71 : vector<8x10xf32>
    %cst_32 = arith.constant dense<0.000000e+00> : vector<8xf32>
    %73 = vector.multi_reduction <add>, %72, %cst_32 [1] : vector<8x10xf32> to vector<8xf32>
    %74 = vector.shape_cast %73 : vector<8xf32> to vector<8x1xf32>
    %75 = vector.broadcast %74 : vector<8x1xf32> to vector<8x10xf32>
    %76 = arith.divf %72, %75 : vector<8x10xf32>
    %77 = vector.shape_cast %67 : vector<8x8xf32> to vector<8x8x1xf32>
    %78 = vector.broadcast %77 : vector<8x8x1xf32> to vector<8x8x32xf32>
    %79 = arith.mulf %78, %0 : vector<8x8x32xf32>
    %cst_33 = arith.constant dense<0.000000e+00> : vector<8x32xf32>
    %80 = vector.multi_reduction <add>, %79, %cst_33 [1] : vector<8x8x32xf32> to vector<8x32xf32>
    %81 = vector.shape_cast %76 : vector<8x10xf32> to vector<8x10x1xf32>
    %82 = vector.broadcast %81 : vector<8x10x1xf32> to vector<8x10x48xf32>
    %83 = arith.mulf %82, %1 : vector<8x10x48xf32>
    %cst_34 = arith.constant dense<0.000000e+00> : vector<8x48xf32>
    %84 = vector.multi_reduction <add>, %83, %cst_34 [1] : vector<8x10x48xf32> to vector<8x48xf32>
    %85 = tpu.concatenate %80, %84 in 1 : vector<8x32xf32>, vector<8x48xf32> -> vector<8x80xf32>
    %c0_35 = arith.constant 0 : index
    %c0_36 = arith.constant 0 : index
    %86 = vector.load %arg5[%c0_35, %c0_36] : memref<8x80xf32, #tpu.memory_space<vmem>>, vector<8x80xf32>
    tpu.vector_store %arg5[%c0_35, %c0_36], %85 {strides = array<i32>} : memref<8x80xf32, #tpu.memory_space<vmem>>, vector<8x80xf32>,
    return
  }
  func.func @transform_0(%arg0: i32) -> (i32, i32, i32) {
    %c0_i32 = arith.constant 0 : i32
    %c0_i32_0 = arith.constant 0 : i32
    %c0_i32_1 = arith.constant 0 : i32
    %c0_i32_2 = arith.constant 0 : i32
    return %c0_i32, %c0_i32_0, %c0_i32_1 : i32, i32, i32
  }
  func.func @transform_1(%arg0: i32) -> (i32, i32, i32) {
    %c0_i32 = arith.constant 0 : i32
    %c0_i32_0 = arith.constant 0 : i32
    %c0_i32_1 = arith.constant 0 : i32
    return %arg0, %c0_i32, %c0_i32_0 : i32, i32, i32
  }
  func.func @transform_2(%arg0: i32) -> (i32, i32, i32) {
    %c0_i32 = arith.constant 0 : i32
    %c0_i32_0 = arith.constant 0 : i32
    %c0_i32_1 = arith.constant 0 : i32
    return %arg0, %c0_i32, %c0_i32_0 : i32, i32, i32
  }
  func.func @transform_3(%arg0: i32) -> (i32, i32) {
    %c0_i32 = arith.constant 0 : i32
    %c0_i32_0 = arith.constant 0 : i32
    return %arg0, %c0_i32 : i32, i32
  }
  func.func @transform_4(%arg0: i32) -> (i32, i32) {
    %c0_i32 = arith.constant 0 : i32
    %c0_i32_0 = arith.constant 0 : i32
    return %arg0, %c0_i32 : i32, i32
  }
}

</mosaic_0001>

<bundles_post_ra>
// kernel: tpu_custom_call.1
= control target key start
LH: loop header
LB: loop body
LE: loop exit
PB: predicated region body
PF: predicated region fallthrough
CT: control target
= control target key end

     0   :  { %9 = vsyncpa [#allocation3], 0  ;;  %s3191_s0 = inlined_call_operand.vmem [shape: f32[4,32,48], index: 0, kind: input, shape index: {}]   ;;  %s3192_s1 = inlined_call_operand.vmem [shape: f32[16,8,32], index: 1, kind: input, shape index: {}]   ;;  %s3193_s2 = inlined_call_operand.vmem [shape: f32[16,10,48], index: 2, kind: input, shape index: {}]   ;;  %s3194_s3 = inlined_call_operand.vmem [shape: f32[16,4], index: 3, kind: input, shape index: {}]   ;;  %s3195_s4 = inlined_call_operand.hbm [shape: f32[16,80], index: 4, kind: output, shape index: {}]  }
   0x1   :  { %11 = vsyncpa [#allocation3 + $0x1], 0  ;;  %s2172_s15 = smov 0   ;;  %s2174_s16 = smov 0  }
   0x2   :  { %s2176_s17 = smov 0   ;;  %s2178_s18 = smov 0  }
   0x3 LB: > { %s2193_s19 = sadd.s32 4294967295, %s2140_s18   ;;  %s1871_s20 = sadd.s32 4294967294, %s2140_s18   ;;  %s2140_s18 = sphi %s2178_s18, %s3245_s18   ;;  %s2136_s17 = sphi %s2176_s17, %s3244_s17   ;;  %s2132_s16 = sphi %s2174_s16, %s3243_s16   ;;  %s2128_s15 = sphi %s2172_s15, %s3242_s15  }
   0x4   : > { %s2197_s21 = sadd.s32 1, %s2140_s18   ;;  %s123_s22 = sadd.s32 1, %s2136_s17 }
   0x5   : > { %s120_s23 = ssub.s32 %s2140_s18, %s2197_s21  ;;  %p133_p0 = scmp.ne.s32.totalorder %s2136_s17, %s2132_s16 }
   0x6   : > { %p121_p1 = scmp.eq.s32.totalorder %s120_s23, 0  ;;  %p134_p2 = scmp.eq.s32.totalorder %s2193_s19, 1 }
   0x7   : > { %p139_p3 = scmp.ne.s32.totalorder %s2132_s16, %s2128_s15  ;;  %p140_p4 = scmp.eq.s32.totalorder %s1871_s20, 1 }
   0x8   : > { %s2208_s24 = scalar_select %p121_p1, %s2136_s17, %s123_s22  }
   0x9   : > { %p2210_p5 = por %p134_p2, %p133_p0  ;;  %p2214_p6 = por %p140_p4, %p139_p3 }
   0xa   : > { %p1874_p7 = scmp.ge.s32.totalorder %s2140_s18, 1  ;;  %p187_p8 = scmp.lt.s32.totalorder %s2140_s18, 3 }
   0xc   : > { %p188_p9 = pnand %p1874_p7, %p187_p8 }
   0xd   : > { %s2230_s7 = sshll.u32 (!%p188_p9), %s2193_s19, 3  ;;  %p236_p11 = scmp.lt.s32.totalorder (!%p188_p9), %s2193_s19, 1 }
   0xe   : > { %191 = sbr.rel (%p188_p9) target bundleno = 1158 (0x486), region = 36  ;;  %p224_p10 = scmp.lt.s32.totalorder (!%p188_p9), %s2230_s7, 15 }
   0xf   : > { %s2146_s22 = smov (!%p188_p9), 32   ;;  %s1783_s28 = scalar_lea.hbm (!%p188_p9), %s3195_s4, %s2230_s7 }
  0x10   : > { %s1787_s5 = sshll.u32 (!%p188_p9), %s1783_s28, 4  ;;  %s1788_s5 = int_to_ptr.hbm [resolvable:$true] %s1787_s5 }
  0x13   : > { %vm3198_vm0 = vcmask 392192   ;;  %v399_v0 = vld [vmem:[%s3191_s0 + $0x18] sm:$0xff]  ;;  %v398_v2 = vld [vmem:[%s3191_s0 + $0x10] sm:$0xff]  ;;  %v397_v3 = vld [vmem:[%s3191_s0 + $0x8] sm:$0xff]  ;;  %s2242_s12 = scalar_select %p224_p10, %s2230_s7, 15  ;;  %vm265_vm1 = vcmask 261120  }
  0x14   : > { %v1891_v1 = vld [vmem:[%s3191_s0 + $0x38] sm:$0xff]  ;;  %1882 = vmatpush.xpose.msk.msra.mxu0 %vm3198_vm0, %v399_v0  ;;  %492 = vmatpush.msra.mxu1 %v399_v0  ;;  %v1890_v4 = vld [vmem:[%s3191_s0 + $0x30] sm:$0xff]  ;;  %v396_v5 = vld [vmem:[%s3191_s0] sm:$0xff]  ;;  %vm408_vm2 = vcmask 1041409   ;;  %vm3199_vm3 = vcmask 386048   ;;  %vm410_vm4 = vcmask 1042434  }
  0x15   : > { %1892 = vmatpush.xpose.msk.msra.mxu2 %vm3198_vm0, %v1891_v1  ;;  %557 = vmatpush.msra.mxu3 %v1891_v1  ;;  %v1901_v6 = vld [vmem:[%s3191_s0 + $0x58] sm:$0xff]  ;;  %v1889_v7 = vld [vmem:[%s3191_s0 + $0x28] sm:$0xff]  ;;  %v1888_v8 = vld [vmem:[%s3191_s0 + $0x20] sm:$0xff]  ;;  %s1877_s30 = sshll.u32 %s2242_s12, 3  ;;  %s1922_s14 = sshll.u32 %s2242_s12, 4  ;;  %vm412_vm5 = vcmask 1043459  }
  0x16   : > { %493 = vmatpush.msra.mxu1 %v398_v2  ;;  %s2262_s8 = scalar_lea.vmem %s3192_s1, %s1877_s30  ;;  %v1900_v9 = vld [vmem:[%s3191_s0 + $0x50] sm:$0xff]  ;;  %v1911_v29 = vld [vmem:[%s3191_s0 + $0x78] sm:$0xff]  ;;  %v1899_v38 = vld [vmem:[%s3191_s0 + $0x48] sm:$0xff]  ;;  %vm414_vm6 = vcmask 1044484   ;;  %vm3200_vm7 = vcmask 1045509   ;;  %s2324_s27 = scalar_lea.vmem %s3193_s2, %s1922_s14  ;;  %vm3197_vm8 = vcmask 1046534  }
  0x17   : > { %558 = vmatpush.msra.mxu3 %v1890_v4  ;;  %v2268_v10 = vld [vmem:[%s2262_s8] sm:$0xff]  ;;  %v2271_v11 = vld [vmem:[%s2262_s8 + $0x8] sm:$0xff]  ;;  %v2274_v12 = vld [vmem:[%s2262_s8 + $0x10] sm:$0xff]  ;;  %vm3196_vm9 = vcmask 1047559   ;;  %s3247_s19 = smov (!%p236_p11, %s2193_s19), 1  ;;  %vm867_vm10 = vcmask 64512  }
  0x18   : > { %1883 = vmatpush.xpose.msk.msra.mxu0 %vm3198_vm0, %v398_v2  ;;  %494 = vmatpush.msra.mxu1 %v397_v3  ;;  %v2278_v13 = vld [vmem:[%s2262_s8 + $0x18] sm:$0xff]  ;;  %v2281_v14 = vld [vmem:[%s2262_s8 + $0x20] sm:$0xff]  ;;  %v2284_v15 = vld [vmem:[%s2262_s8 + $0x28] sm:$0xff]  ;;  %v266_v16 = vsel %vm265_vm1, %v2268_v10, 0.0  ;;  %v273_v17 = vsel %vm265_vm1, %v2271_v11, 0.0  ;;  %v280_v18 = vsel %vm265_vm1, %v2274_v12, 0.0 }
  0x19   : > { %1893 = vmatpush.xpose.msk.msra.mxu2 %vm3198_vm0, %v1890_v4  ;;  %559 = vmatpush.msra.mxu3 %v1889_v7  ;;  %v2294_v19 = vld [vmem:[%s2262_s8 + $0x30] sm:$0xff]  ;;  %v2297_v20 = vld [vmem:[%s2262_s8 + $0x38] sm:$0xff]  ;;  %v267_v21 = vrot.slane %v266_v16, 4  ;;  %v274_v22 = vrot.slane %v273_v17, 4  ;;  %v281_v23 = vrot.slane %v280_v18, 4  ;;  %v287_v24 = vsel %vm265_vm1, %v2278_v13, 0.0 }
  0x1a   : > { %495 = vmatpush.msra.mxu1 %v396_v5  ;;  %v288_v25 = vrot.slane %v287_v24, 4  ;;  %v294_v26 = vsel %vm265_vm1, %v2281_v14, 0.0  ;;  %v301_v27 = vsel %vm265_vm1, %v2284_v15, 0.0  ;;  %v308_v28 = vsel %vm265_vm1, %v2294_v19, 0.0  ;;  %v1910_v51 = vld [vmem:[%s3191_s0 + $0x70] sm:$0xff]  ;;  %v2332_v0 = vld [vmem:[%s2324_s27] sm:$0xff] }
  0x1b   : > { %560 = vmatpush.msra.mxu3 %v1888_v8  ;;  %v268_v30 = vadd.f32 %v267_v21, %v266_v16  ;;  %v275_v31 = vadd.f32 %v274_v22, %v273_v17  ;;  %v282_v32 = vadd.f32 %v281_v23, %v280_v18  ;;  %v295_v33 = vrot.slane %v294_v26, 4  ;;  %v2335_v1 = vld [vmem:[%s2324_s27 + $0x8] sm:$0x3]  ;;  %v2341_v17 = vld [vmem:[%s2324_s27 + $0x18] sm:$0x3]  ;;  %v1898_v18 = vld [vmem:[%s3191_s0 + $0x40] sm:$0xff] }
  0x1c   : > { %1902 = vmatpush.xpose.msk.msrb.mxu1 %vm3198_vm0, %v1901_v6  ;;  %1884 = vmatpush.xpose.msk.msra.mxu0 %vm3198_vm0, %v397_v3  ;;  %v289_v34 = vadd.f32 %v288_v25, %v287_v24  ;;  %v302_v35 = vrot.slane %v301_v27, 4  ;;  %v309_v36 = vrot.slane %v308_v28, 4  ;;  %v315_v37 = vsel %vm265_vm1, %v2297_v20, 0.0  ;;  %v1909_v21 = vld [vmem:[%s3191_s0 + $0x68] sm:$0xff]  ;;  %v2351_v24 = vld [vmem:[%s2324_s27 + $0x20] sm:$0xff]  ;;  %s1881_s13 = sshll.u32 %s3247_s19, 3 }
  0x1d   : > { %622 = vmatpush.msrb.mxu3 %v1901_v6  ;;  %1894 = vmatpush.xpose.msk.msra.mxu2 %vm3198_vm0, %v1889_v7  ;;  %v269_v39 = vrot.slane %v268_v30, 2  ;;  %v276_v40 = vrot.slane %v275_v31, 2  ;;  %v283_v41 = vrot.slane %v282_v32, 2  ;;  %v296_v42 = vadd.f32 %v295_v33, %v294_v26  ;;  %v2338_v6 = vld [vmem:[%s2324_s27 + $0x10] sm:$0xff]  ;;  %s239_s20 = scalar_lea.vmem %s3194_s3, %s1881_s13  ;;  %s220_s12 = sand.u32 1, %s2132_s16  }
  0x1e   : > { %v290_v43 = vrot.slane %v289_v34, 2  ;;  %v303_v44 = vadd.f32 %v302_v35, %v301_v27  ;;  %v310_v45 = vadd.f32 %v309_v36, %v308_v28  ;;  %v316_v46 = vrot.slane %v315_v37, 4  ;;  %v1908_v27 = vld [vmem:[%s3191_s0 + $0x60] sm:$0xff]  ;;  %v2366_v33 = vld [vmem:[%s2324_s27 + $0x30] sm:$0xff]  ;;  %v2372_v35 = vld [vmem:[%s2324_s27 + $0x38] sm:$0x3] }
  0x1f   : > { %623 = vmatpush.msrb.mxu3 %v1900_v9  ;;  %v270_v47 = vadd.f32 %v269_v39, %v268_v30  ;;  %v277_v48 = vadd.f32 %v276_v40, %v275_v31  ;;  %v284_v49 = vadd.f32 %v283_v41, %v282_v32  ;;  %v297_v50 = vrot.slane %v296_v42, 2  ;;  %v2363_v32 = vld [vmem:[%s2324_s27 + $0x28] sm:$0x3]  ;;  %v2380_v41 = vld [vmem:[%s2324_s27 + $0x40] sm:$0xff]  ;;  %s1875_s23 = sshll.u32 %s220_s12, 3  ;;  %s1773_s6 = scalar_lea.sflag [#allocation3], %s220_s12 }
  0x20   : > { %1903 = vmatpush.xpose.msk.msrb.mxu1 %vm3198_vm0, %v1900_v9  ;;  %1885 = vmatpush.xpose.msk.msra.mxu0 %vm3198_vm0, %v396_v5  ;;  %v291_v52 = vadd.f32 %v290_v43, %v289_v34  ;;  %v304_v53 = vrot.slane %v303_v44, 2  ;;  %v311_v54 = vrot.slane %v310_v45, 2  ;;  %v317_v55 = vadd.f32 %v316_v46, %v315_v37  ;;  %v2389_v46 = vld [vmem:[%s2324_s27 + $0x50] sm:$0xff]  ;;  %s222_s29 = scalar_lea.vmem [#allocation2], %s1875_s23  ;;  %s2092_s7 = sshra.s32 %s1788_s5, 4  ;;  %s2093_s7 = int_to_ptr.hbm [resolvable:$true] %s2092_s7 }
  0x21   : > { %624 = vmatpush.msrb.mxu3 %v1899_v38  ;;  %1895 = vmatpush.xpose.msk.msra.mxu2 %vm3198_vm0, %v1888_v8  ;;  %v271_v56 = vrot.slane %v270_v47, 1  ;;  %v278_v57 = vrot.slane %v277_v48, 1  ;;  %v285_v58 = vrot.slane %v284_v49, 1  ;;  %v298_v59 = vadd.f32 %v297_v50, %v296_v42  ;;  %s1785_s30 = sshll.u32 %s222_s29, 4  ;;  %s2094_s9 = scalar_lea.hbm %s2093_s7, 8  ;;  %s1786_s30 = int_to_ptr.vmem [resolvable:$true] %s1785_s30 }
  0x22   : > { %v292_v60 = vrot.slane %v291_v52, 1  ;;  %v305_v61 = vadd.f32 %v304_v53, %v303_v44  ;;  %v312_v62 = vadd.f32 %v311_v54, %v310_v45  ;;  %v318_v63 = vrot.slane %v317_v55, 2  ;;  %v2386_v45 = vld [vmem:[%s2324_s27 + $0x48] sm:$0x3]  ;;  %p2095_p12 = scmp.ne.s32.totalorder %s2093_s7, %s2094_s9  ;;  %s2098_s13 = scalar_lea.hbm %s3195_s4, 16 }
  0x23   : > { %v272_v2 = vadd.f32 %v271_v56, %v270_v47  ;;  %v279_v3 = vadd.f32 %v278_v57, %v277_v48  ;;  %v286_v4 = vadd.f32 %v285_v58, %v284_v49  ;;  %v299_v5 = vrot.slane %v298_v59, 1  ;;  %625 = vmatpush.msrb.mxu3 %v1898_v18  ;;  %v2411_v56 = vld [vmem:[%s2324_s27 + $0x60] sm:$0xff]  ;;  %p2099_p1 = scmp.lt.s32.totalorder %s2093_s7, %s3195_s4  ;;  %p2100_p2 = scmp.lt.s32.totalorder %s2098_s13, %s2094_s9 }
  0x24   : > { %1912 = vmatpush.xpose.msk.msrb.mxu0 %vm3198_vm0, %v1911_v29  ;;  %1904 = vmatpush.xpose.msk.msrb.mxu1 %vm3198_vm0, %v1899_v38  ;;  %v293_v7 = vadd.f32 %v292_v60, %v291_v52  ;;  %v306_v8 = vrot.slane %v305_v61, 1  ;;  %v313_v9 = vrot.slane %v312_v62, 1  ;;  %v319_v16 = vadd.f32 %v318_v63, %v317_v55  ;;  %v2420_v60 = vld [vmem:[%s2324_s27 + $0x68] sm:$0x3]  ;;  %p2096_p13 = pnand %p2095_p12, %p2210_p5 }
  0x25   : > { %687 = vmatpush.msrb.mxu2 %v1911_v29  ;;  %v300_v22 = vadd.f32 %v299_v5, %v298_v59  ;;  %v471_v23 = vsel %vm408_vm2, %v279_v3, %v272_v2  ;;  %v323_v25 = vsel %vm3198_vm0, %v2332_v0, 0.0  ;;  %v325_v26 = vsel %vm3199_vm3, %v2335_v1, 0.0  ;;  %p2101_p3 = por %p2100_p2, %p2099_p1 }
  0x26   : > { %v307_v28 = vadd.f32 %v306_v8, %v305_v61  ;;  %v314_v29 = vadd.f32 %v313_v9, %v312_v62  ;;  %v320_v30 = vrot.slane %v319_v16, 1  ;;  %v472_v31 = vsel %vm410_vm4, %v286_v4, %v471_v23  ;;  %v2429_v8 = vld [vmem:[%s2324_s27 + $0x70] sm:$0xff]  ;;  %p2097_p0 = pneg %p2096_p13 }
  0x27   : > { %688 = vmatpush.msrb.mxu2 %v1910_v51  ;;  %v473_v34 = vsel %vm412_vm5, %v293_v7, %v472_v31  ;;  %v326_v36 = vadd.f32 %v325_v26, %v323_v25  ;;  %v333_v37 = vsel %vm3198_vm0, %v2338_v6, 0.0  ;;  %v334_v38 = vsel %vm3199_vm3, %v2341_v17, 0.0 }
  0x28   : > { %1913 = vmatpush.xpose.msk.msrb.mxu0 %vm3198_vm0, %v1910_v51  ;;  %1905 = vmatpush.xpose.msk.msrb.mxu1 %vm3198_vm0, %v1898_v18  ;;  %v321_v39 = vadd.f32 %v320_v30, %v319_v16  ;;  %v474_v40 = vsel %vm414_vm6, %v300_v22, %v473_v34  ;;  %v335_v42 = vadd.f32 %v334_v38, %v333_v37  ;;  %v342_v43 = vsel %vm3198_vm0, %v2351_v24, 0.0  ;;  %v2397_v51 = vld [vmem:[%s2324_s27 + $0x58] sm:$0x3]  ;;  %p2102_p4 = pnand %p2101_p3, %p2097_p0 }
  0x29   : > { %689 = vmatpush.msrb.mxu2 %v1909_v21  ;;  %v475_v44 = vsel %vm3200_vm7, %v307_v28, %v474_v40  ;;  %v327_v47 = vrot.slane %v326_v36, 4  ;;  %v343_v48 = vsel %vm3199_vm3, %v2363_v32, 0.0  ;;  %v351_v49 = vsel %vm3198_vm0, %v2366_v33, 0.0 }
  0x2a   : > { %v476_v50 = vsel %vm3197_vm8, %v314_v29, %v475_v44  ;;  %v336_v52 = vrot.slane %v335_v42, 4  ;;  %v344_v53 = vadd.f32 %v343_v48, %v342_v43  ;;  %v352_v54 = vsel %vm3199_vm3, %v2372_v35, 0.0 }
  0x2b   : > { %690 = vmatpush.msrb.mxu2 %v1908_v27  ;;  %v2408_v55 = vsel %vm3196_vm9, %v321_v39, %v476_v50  ;;  %v328_v57 = vadd.f32 %v327_v47, %v326_v36  ;;  %v353_v58 = vadd.f32 %v352_v54, %v351_v49  ;;  %v360_v59 = vsel %vm3198_vm0, %v2380_v41, 0.0 }
  0x2c   : > { %1914 = vmatpush.xpose.msk.msrb.mxu0 %vm3198_vm0, %v1909_v21  ;;  %1887 = vmatmul.msk.f32.vlgmr.msra.gmra.mxu1 %vm265_vm1, %v2408_v55  ;;  %v337_v61 = vadd.f32 %v336_v52, %v335_v42  ;;  %v345_v62 = vrot.slane %v344_v53, 4  ;;  %v361_v63 = vsel %vm3199_vm3, %v2386_v45, 0.0  ;;  %v369_v2 = vsel %vm3198_vm0, %v2389_v46, 0.0 }
  0x2d   : > { %1897 = vmatmul.msk.f32.vlgmr.msra.gmra.mxu3 %vm265_vm1, %v2408_v55  ;;  %v329_v3 = vrot.slane %v328_v57, 2  ;;  %v354_v4 = vrot.slane %v353_v58, 4  ;;  %v362_v5 = vadd.f32 %v361_v63, %v360_v59  ;;  %v370_v7 = vsel %vm3199_vm3, %v2397_v51, 0.0 }
  0x2e   : > { %v338_v9 = vrot.slane %v337_v61, 2  ;;  %v346_v16 = vadd.f32 %v345_v62, %v344_v53  ;;  %v371_v18 = vadd.f32 %v370_v7, %v369_v2  ;;  %v378_v21 = vsel %vm3198_vm0, %v2411_v56, 0.0 }
  0x2f   : > { %v330_v22 = vadd.f32 %v329_v3, %v328_v57  ;;  %v355_v23 = vadd.f32 %v354_v4, %v353_v58  ;;  %v363_v25 = vrot.slane %v362_v5, 4  ;;  %v379_v26 = vsel %vm3199_vm3, %v2420_v60, 0.0  ;;  %v264_v57 = vld [vmem:[%s239_s20] sm:$0xff] }
  0x30   : > { %1915 = vmatpush.xpose.msk.msrb.mxu0 %vm3198_vm0, %v1908_v27  ;;  %v2437_v27 = vld [vmem:[%s2324_s27 + $0x78] sm:$0x3]  ;;  %v339_v28 = vadd.f32 %v338_v9, %v337_v61  ;;  %v347_v29 = vrot.slane %v346_v16, 2  ;;  %v372_v30 = vrot.slane %v371_v18, 4  ;;  %v380_v31 = vadd.f32 %v379_v26, %v378_v21 }
  0x31   : > { %v331_v34 = vrot.slane %v330_v22, 1  ;;  %v356_v36 = vrot.slane %v355_v23, 2  ;;  %v364_v37 = vadd.f32 %v363_v25, %v362_v5  ;;  %v387_v38 = vsel %vm3198_vm0, %v2429_v8, 0.0 }
  0x32   : > { %v340_v39 = vrot.slane %v339_v28, 1  ;;  %v348_v40 = vadd.f32 %v347_v29, %v346_v16  ;;  %v373_v42 = vadd.f32 %v372_v30, %v371_v18  ;;  %v381_v43 = vrot.slane %v380_v31, 4 }
  0x33   : > { %v332_v44 = vadd.f32 %v331_v34, %v330_v22  ;;  %v357_v47 = vadd.f32 %v356_v36, %v355_v23  ;;  %v365_v48 = vrot.slane %v364_v37, 2  ;;  %v388_v49 = vsel %vm3199_vm3, %v2437_v27, 0.0 }
  0x34   : > { %v341_v50 = vadd.f32 %v340_v39, %v339_v28  ;;  %v349_v52 = vrot.slane %v348_v40, 1  ;;  %v374_v53 = vrot.slane %v373_v42, 2  ;;  %v382_v54 = vadd.f32 %v381_v43, %v380_v31 }
  0x35   : > { %1907 = vmatmul.msk.f32.vlgmr.msrb.gmra.mxu3 %vm265_vm1, %v2408_v55  ;;  %v358_v58 = vrot.slane %v357_v47, 1  ;;  %v366_v59 = vadd.f32 %v365_v48, %v364_v37  ;;  %v389_v61 = vadd.f32 %v388_v49, %v387_v38  ;;  %v2142_v4 = vmov 0  }
  0x36   : > { %v350_v62 = vadd.f32 %v349_v52, %v348_v40  ;;  %v375_v63 = vadd.f32 %v374_v53, %v373_v42  ;;  %v383_v2 = vrot.slane %v382_v54, 2  ;;  %v409_v3 = vsel %vm408_vm2, %v341_v50, %v332_v44  ;;  %1967 = vset.pattern.permute.xlu0 %v2142_v4  ;;  %1972 = vset.pattern.permute.xlu2 %v2142_v4 }
  0x37   : > { %v359_v5 = vadd.f32 %v358_v58, %v357_v47  ;;  %v367_v7 = vrot.slane %v366_v59, 1  ;;  %v390_v9 = vrot.slane %v389_v61, 4  ;;  %458 = vperm.xlu0 %1967, %v264_v57   ;;  %v2143_v22 = vmov 2  }
  0x38   : > { %v376_v16 = vrot.slane %v375_v63, 1  ;;  %v384_v18 = vadd.f32 %v383_v2, %v382_v54  ;;  %v411_v21 = vsel %vm410_vm4, %v350_v62, %v409_v3  ;;  %1969 = vset.pattern.permute.xlu1 %v2143_v22  ;;  %v2144_v39 = vmov 1  }
  0x39   : > { %v368_v23 = vadd.f32 %v367_v7, %v366_v59  ;;  %v391_v25 = vadd.f32 %v390_v9, %v389_v61  ;;  %v413_v26 = vsel %vm412_vm5, %v359_v5, %v411_v21  ;;  %605 = vperm.xlu1 %1969, %v264_v57   ;;  %v2145_v43 = vmov 3  }
  0x3a   : > { %v377_v28 = vadd.f32 %v376_v16, %v375_v63  ;;  %v385_v29 = vrot.slane %v384_v18, 1  ;;  %vm1119_vm11 = vcmask 130112   ;;  %vm1150_vm12 = vcmask 80896  }
  0x3b   : > { %v392_v30 = vrot.slane %v391_v25, 2  ;;  %v415_v31 = vsel %vm414_vm6, %v368_v23, %v413_v26 }
  0x3c   : > { %v386_v34 = vadd.f32 %v385_v29, %v384_v18  ;;  %v417_v37 = vsel %vm3200_vm7, %v377_v28, %v415_v31 }
  0x3d   : > { %v393_v36 = vadd.f32 %v392_v30, %v391_v25 }
  0x3e   : > { %v419_v40 = vsel %vm3197_vm8, %v386_v34, %v417_v37 }
  0x3f   : > { %v394_v38 = vrot.slane %v393_v36, 1  ;;  %1968 = vset.pattern.permute.xlu0 %v2144_v39 }
  0x40   : > { %540 = vperm.xlu0 %1968, %v264_v57  }
  0x41   : > { %v395_v42 = vadd.f32 %v394_v38, %v393_v36  ;;  %1970 = vset.pattern.permute.xlu1 %v2145_v43 }
  0x42   : > { %670 = vperm.xlu1 %1970, %v264_v57  }
  0x43   : > { %v421_v44 = vsel %vm3196_vm9, %v395_v42, %v419_v40 }
  0x44   : > { %1886 = vmatmul.msk.f32.vlgmr.msra.gmra.mxu0 %vm3198_vm0, %v421_v44  ;;  %1896 = vmatmul.msk.f32.vlgmr.msra.gmra.mxu2 %vm3198_vm0, %v421_v44 }
  0x45   : > { %1906 = vmatmul.msk.f32.vlgmr.msrb.gmra.mxu1 %vm3198_vm0, %v421_v44 }
  0x48   : > { %1973 = vset.pattern.permute.xlu0 %v2142_v4 }
  0x4a   : > { %1971 = vset.pattern.permute.xlu1 %v2142_v4 }
  0x4c   : > { %1917 = vmatmul.msk.f32.vlgmr.msrb.gmra.mxu2 %vm265_vm1, %v2408_v55  ;;  %1916 = vmatmul.msk.f32.vlgmr.msrb.gmra.mxu0 %vm3198_vm0, %v421_v44 }
  0xa9   : > { %v459_v47 = vpop.permute.xlu0 %458  ;;  %v497_v50 = vpop.f32.mrf.mxu1 }
  0xaa   : > { %v500_v2 = vmul.f32 %v497_v50, %v459_v47 }
  0xab   : > { %v606_v48 = vpop.permute.xlu1 %605 }
  0xb0   : > { %v562_v49 = vpop.f32.mrf.mxu3 }
  0xb2   : > { %v541_v53 = vpop.permute.xlu0 %540 }
  0xb3   : > { %v565_v62 = vmul.f32 %v562_v49, %v541_v53 }
  0xb4   : > { %v671_v54 = vpop.permute.xlu1 %670 }
  0xb5   : > { %v566_v9 = vadd.f32 %v565_v62, %v500_v2 }
  0xb8   : > { %v627_v57 = vpop.f32.mrf.mxu3 }
  0xb9   : > { %v630_v7 = vmul.f32 %v627_v57, %v606_v48 }
  0xbb   : > { %v631_v21 = vadd.f32 %v630_v7, %v566_v9 }
  0xc1   : > { %v453_v52 = vpop.f32.mrf.mxu0 }
  0xc2   : > { %v601_v59 = vpop.f32.mrf.mxu1  ;;  %v461_v61 = vmul.f32 %v459_v47, %v453_v52 }
  0xc3   : > { %v608_v5 = vmul.f32 %v606_v48, %v601_v59 }
  0xc7   : > { %v536_v58 = vpop.f32.mrf.mxu2 }
  0xc8   : > { %v543_v63 = vmul.f32 %v541_v53, %v536_v58 }
  0xc9   : > { %v666_v3 = vpop.f32.mrf.mxu0 }
  0xca   : > { %v544_v4 = vadd.f32 %v543_v63, %v461_v61  ;;  %v673_v55 = vmul.f32 %v671_v54, %v666_v3 }
  0xcc   : > { %v609_v16 = vadd.f32 %v608_v5, %v544_v4 }
  0xce   : > { %v2461_v18 = vadd.f32 %v673_v55, %v609_v16 }
  0xcf   : > { %v692_v22 = vpop.f32.mrf.mxu2 }
  0xd0   : > { %v695_v23 = vmul.f32 %v692_v22, %v671_v54  ;;  %v705_v25 = vperm.slane %v2461_v18, 0  ;;  %v701_v26 = vrot.slane %v2461_v18, 4  ;;  %v699_v28 = vrot.slane %v2461_v18, 2 }
  0xd1   : > { %v698_v29 = vrot.slane %v2461_v18, 1 }
  0xd2   : > { %v2467_v30 = vadd.f32 %v695_v23, %v631_v21  ;;  %v721_v31 = vmul.f32 %v705_v25, %v2268_v10  ;;  %v709_v34 = vperm.slane %v701_v26, 0  ;;  %v707_v36 = vperm.slane %v699_v28, 0 }
  0xd3   : > { %v706_v37 = vperm.slane %v698_v29, 0  ;;  %v704_v28 = vrot.slane %v2461_v18, 7 }
  0xd4   : > { %v729_v38 = vsel %vm265_vm1, %v721_v31, 0.0  ;;  %v725_v39 = vmul.f32 %v709_v34, %v2281_v14  ;;  %v723_v40 = vmul.f32 %v707_v36, %v2274_v12  ;;  %v755_v42 = vrot.slane %v2467_v30, 2 }
  0xd5   : > { %730 = vadd.xlane.f32.xlu2 %v729_v38  ;;  %v754_v43 = vrot.slane %v2467_v30, 1  ;;  %v722_v49 = vmul.f32 %v706_v37, %v2271_v11  ;;  %v700_v14 = vrot.slane %v2461_v18, 3  ;;  %v756_v52 = vrot.slane %v2467_v30, 3 }
  0xd6   : > { %v741_v44 = vsel %vm265_vm1, %v725_v39, 0.0  ;;  %v735_v47 = vsel %vm265_vm1, %v723_v40, 0.0  ;;  %v763_v48 = vperm.slane %v755_v42, 0  ;;  %v758_v62 = vrot.slane %v2467_v30, 5 }
  0xd7   : > { %742 = vadd.xlane.f32.xlu0 %v741_v44  ;;  %736 = vadd.xlane.f32.xlu1 %v735_v47  ;;  %v2477_v10 = vperm.slane %v754_v43, 0  ;;  %v732_v53 = vsel %vm265_vm1, %v722_v49, 0.0  ;;  %v708_v54 = vperm.slane %v700_v14, 0  ;;  %v764_v59 = vperm.slane %v756_v52, 0 }
  0xd8   : > { %v781_v12 = vmul.f32 %v763_v48, %v2351_v24  ;;  %v702_v24 = vrot.slane %v2461_v18, 5  ;;  %v757_v63 = vrot.slane %v2467_v30, 4  ;;  %v766_v55 = vperm.slane %v758_v62, 0 }
  0xd9   : > { %v779_v50 = vmul.f32 %v2477_v10, %v2338_v6  ;;  %v724_v11 = vmul.f32 %v708_v54, %v2278_v13  ;;  %v784_v61 = vmul.f32 %v764_v59, %v2372_v35  ;;  %v782_v6 = vmul.f32 %v763_v48, %v2363_v32 }
  0xda   : > { %v805_v57 = vsel %vm3198_vm0, %v781_v12, 0.0  ;;  %v710_v3 = vperm.slane %v702_v24, 0  ;;  %v765_v13 = vperm.slane %v757_v63, 0  ;;  %v703_v32 = vrot.slane %v2461_v18, 6 }
  0xdb   : > { %v799_v58 = vsel %vm3198_vm0, %v779_v50, 0.0  ;;  %v738_v2 = vsel %vm265_vm1, %v724_v11, 0.0  ;;  %v814_v4 = vsel %vm3199_vm3, %v784_v61, 0.0  ;;  %v808_v5 = vsel %vm3199_vm3, %v782_v6, 0.0 }
  0xdc   : > { %v726_v35 = vmul.f32 %v710_v3, %v2284_v15  ;;  %v787_v7 = vmul.f32 %v766_v55, %v2389_v46  ;;  %v785_v9 = vmul.f32 %v765_v13, %v2380_v41  ;;  %v759_v16 = vrot.slane %v2467_v30, 6 }
  0xdd   : > { %733 = vadd.xlane.f32.xlu2 %v732_v53  ;;  %v711_v22 = vperm.slane %v703_v32, 0  ;;  %v788_v41 = vmul.f32 %v766_v55, %v2397_v51  ;;  %v760_v29 = vrot.slane %v2467_v30, 7  ;;  %v712_v34 = vperm.slane %v704_v28, 0 }
  0xde   : > { %v744_v21 = vsel %vm265_vm1, %v726_v35, 0.0  ;;  %v823_v23 = vsel %vm3198_vm0, %v787_v7, 0.0  ;;  %v817_v25 = vsel %vm3198_vm0, %v785_v9, 0.0  ;;  %v767_v26 = vperm.slane %v759_v16, 0 }
  0xdf   : > { %806 = vadd.xlane.f32.xlu0 %v805_v57  ;;  %800 = vadd.xlane.f32.xlu1 %v799_v58  ;;  %v727_v15 = vmul.f32 %v711_v22, %v2294_v19  ;;  %v826_v37 = vsel %vm3199_vm3, %v788_v41, 0.0  ;;  %v768_v38 = vperm.slane %v760_v29, 0  ;;  %v728_v19 = vmul.f32 %v712_v34, %v2297_v20 }
  0xe0   : > { %v790_v46 = vmul.f32 %v767_v26, %v2420_v60  ;;  %v761_v51 = vperm.slane %v2467_v30, 0  ;;  %v780_v20 = vmul.f32 %v2477_v10, %v2341_v17  ;;  %v783_v30 = vmul.f32 %v764_v59, %v2366_v33 }
  0xe1   : > { %v747_v31 = vsel %vm265_vm1, %v727_v15, 0.0  ;;  %v791_v18 = vmul.f32 %v768_v38, %v2429_v8  ;;  %v750_v60 = vsel %vm265_vm1, %v728_v19, 0.0  ;;  %v792_v17 = vmul.f32 %v768_v38, %v2437_v27 }
  0xe2   : > { %v832_v36 = vsel %vm3199_vm3, %v790_v46, 0.0  ;;  %v777_v40 = vmul.f32 %v761_v51, %v2332_v0  ;;  %v778_v43 = vmul.f32 %v761_v51, %v2335_v1  ;;  %v802_v8 = vsel %vm3199_vm3, %v780_v20, 0.0 }
  0xe3   : > { %v835_v39 = vsel %vm3198_vm0, %v791_v18, 0.0  ;;  %v811_v47 = vsel %vm3198_vm0, %v783_v30, 0.0  ;;  %v786_v0 = vmul.f32 %v765_v13, %v2386_v45  ;;  %v789_v1 = vmul.f32 %v767_v26, %v2411_v56 }
  0xe4   : > { %v793_v42 = vsel %vm3198_vm0, %v777_v40, 0.0  ;;  %v796_v44 = vsel %vm3199_vm3, %v778_v43, 0.0  ;;  %v838_v10 = vsel %vm3199_vm3, %v792_v17, 0.0  ;;  %v849_v45 = vlaneseq }
  0xe5   : > { %739 = vadd.xlane.f32.xlu2 %v738_v2  ;;  %v820_v48 = vsel %vm3199_vm3, %v786_v0, 0.0  ;;  %v829_v49 = vsel %vm3198_vm0, %v789_v1, 0.0 }
  0xe6   : > { %v2541_v52 = vand.u32 127, %v849_v45 }
  0xe7   : > { %815 = vadd.xlane.f32.xlu0 %v814_v4  ;;  %809 = vadd.xlane.f32.xlu1 %v808_v5 }
  0xe8   : > { %v2596_v28 = vadd.s32 4294967288, %v2541_v52 }
  0xed   : > { %745 = vadd.xlane.f32.xlu2 %v744_v21 }
  0xef   : > { %824 = vadd.xlane.f32.xlu0 %v823_v23  ;;  %818 = vadd.xlane.f32.xlu1 %v817_v25 }
  0xf5   : > { %748 = vadd.xlane.f32.xlu2 %v747_v31 }
  0xf7   : > { %833 = vadd.xlane.f32.xlu0 %v832_v36  ;;  %827 = vadd.xlane.f32.xlu1 %v826_v37 }
  0xfd   : > { %751 = vadd.xlane.f32.xlu2 %v750_v60 }
  0xff   : > { %836 = vadd.xlane.f32.xlu1 %v835_v39 }
 0x105   : > { %794 = vadd.xlane.f32.xlu2 %v793_v42 }
 0x10d   : > { %797 = vadd.xlane.f32.xlu2 %v796_v44 }
 0x115   : > { %803 = vadd.xlane.f32.xlu2 %v802_v8 }
 0x11d   : > { %812 = vadd.xlane.f32.xlu2 %v811_v47 }
 0x125   : > { %821 = vadd.xlane.f32.xlu2 %v820_v48 }
 0x12d   : > { %830 = vadd.xlane.f32.xlu2 %v829_v49 }
 0x135   : > { %839 = vadd.xlane.f32.xlu2 %v838_v10 }
 0x148   : > { %v2533_v14 = vpop.xlane.xlu2 %730 }
 0x149   : > { %v851_v27 = vperm.slane %v2533_v14, %v2541_v52 }
 0x14a   : > { %v2547_v53 = vpop.xlane.xlu1 %736  ;;  %v2556_v11 = vpop.xlane.xlu0 %742 }
 0x14b   : > { %v853_v59 = vperm.slane %v2547_v53, %v2541_v52  ;;  %v855_v62 = vperm.slane %v2556_v11, %v2541_v52 }
 0x150   : > { %v2535_v33 = vpop.xlane.xlu2 %733 }
 0x151   : > { %v852_v56 = vperm.slane %v2535_v33, %v2541_v52 }
 0x152   : > { %v2577_v7 = vpop.xlane.xlu1 %800  ;;  %v2581_v16 = vpop.xlane.xlu0 %806 }
 0x153   : > { %v859_v57 = vsel %vm408_vm2, %v852_v56, %v851_v27  ;;  %v1121_v31 = vperm.slane %v2577_v7, %v2541_v52  ;;  %v1124_v40 = vperm.slane %v2581_v16, %v2541_v52 }
 0x154   : > { %v860_v24 = vsel %vm410_vm4, %v853_v59, %v859_v57 }
 0x158   : > { %v2537_v12 = vpop.xlane.xlu2 %739 }
 0x159   : > { %v854_v58 = vperm.slane %v2537_v12, %v2541_v52 }
 0x15a   : > { %v2583_v21 = vpop.xlane.xlu1 %809  ;;  %v2587_v23 = vpop.xlane.xlu0 %815 }
 0x15b   : > { %v861_v61 = vsel %vm412_vm5, %v854_v58, %v860_v24  ;;  %v1125_v19 = vperm.slane %v2583_v21, %v2596_v28  ;;  %v1128_v51 = vperm.slane %v2587_v23, %v2596_v28 }
 0x15c   : > { %v862_v3 = vsel %vm414_vm6, %v855_v62, %v861_v61 }
 0x15d   : > { %v1126_v8 = vsel %vm1119_vm11, %v1125_v19, %v1124_v40 }
 0x160   : > { %v2539_v50 = vpop.xlane.xlu2 %745 }
 0x161   : > { %v856_v6 = vperm.slane %v2539_v50, %v2541_v52 }
 0x162   : > { %v2591_v26 = vpop.xlane.xlu1 %818  ;;  %v2598_v46 = vpop.xlane.xlu0 %824 }
 0x163   : > { %v863_v5 = vsel %vm3200_vm7, %v856_v6, %v862_v3  ;;  %v1130_v42 = vperm.slane %v2591_v26, %v2541_v52  ;;  %v1133_v10 = vperm.slane %v2598_v46, %v2541_v52 }
 0x168   : > { %v2549_v54 = vpop.xlane.xlu2 %748 }
 0x169   : > { %v857_v63 = vperm.slane %v2549_v54, %v2541_v52 }
 0x16a   : > { %v2602_v29 = vpop.xlane.xlu1 %827  ;;  %v2627_v44 = vpop.xlane.xlu0 %833 }
 0x16b   : > { %v864_v55 = vsel %vm3197_vm8, %v857_v63, %v863_v5  ;;  %v1134_v0 = vperm.slane %v2602_v29, %v2596_v28  ;;  %v1137_v1 = vperm.slane %v2627_v44, %v2596_v28 }
 0x16d   : > { %v1135_v57 = vsel %vm1119_vm11, %v1134_v0, %v1133_v10 }
 0x170   : > { %v2566_v2 = vpop.xlane.xlu2 %751 }
 0x171   : > { %v858_v4 = vperm.slane %v2566_v2, %v2541_v52 }
 0x172   : > { %v2639_v49 = vpop.xlane.xlu1 %836 }
 0x173   : > { %v865_v13 = vsel %vm3196_vm9, %v858_v4, %v864_v55  ;;  %v1139_v58 = vperm.slane %v2639_v49, %v2541_v52 }
 0x174   : > { %v868_v35 = vsel %vm867_vm10, %v865_v13, -inf }
 0x175   : > { %869 = vmax.xlane.f32.xlu0 %v868_v35 }
 0x178   : > { %v2575_v32 = vpop.xlane.xlu2 %794 }
 0x179   : > { %v1116_v36 = vperm.slane %v2575_v32, %v2541_v52 }
 0x180   : > { %v2579_v9 = vpop.xlane.xlu2 %797 }
 0x181   : > { %v1118_v34 = vperm.slane %v2579_v9, %v2596_v28 }
 0x183   : > { %v1120_v39 = vsel %vm1119_vm11, %v1118_v34, %v1116_v36 }
 0x188   : > { %v2585_v22 = vpop.xlane.xlu2 %803 }
 0x189   : > { %v1122_v41 = vperm.slane %v2585_v22, %v2596_v28 }
 0x18b   : > { %v1123_v37 = vsel %vm1119_vm11, %v1122_v41, %v1121_v31 }
 0x18c   : > { %v1142_v43 = vsel %vm408_vm2, %v1123_v37, %v1120_v39 }
 0x18d   : > { %v1143_v48 = vsel %vm410_vm4, %v1126_v8, %v1142_v43 }
 0x190   : > { %v2589_v25 = vpop.xlane.xlu2 %812 }
 0x191   : > { %v1127_v38 = vperm.slane %v2589_v25, %v2541_v52 }
 0x193   : > { %v1129_v20 = vsel %vm1119_vm11, %v1128_v51, %v1127_v38 }
 0x194   : > { %v1144_v17 = vsel %vm412_vm5, %v1129_v20, %v1143_v48 }
 0x198   : > { %v2593_v15 = vpop.xlane.xlu2 %821 }
 0x199   : > { %v1131_v18 = vperm.slane %v2593_v15, %v2596_v28 }
 0x19b   : > { %v1132_v30 = vsel %vm1119_vm11, %v1131_v18, %v1130_v42 }
 0x19c   : > { %v1145_v45 = vsel %vm414_vm6, %v1132_v30, %v1144_v17 }
 0x19d   : > { %v1146_v24 = vsel %vm3200_vm7, %v1135_v57, %v1145_v45 }
 0x1a0   : > { %v2617_v60 = vpop.xlane.xlu2 %830 }
 0x1a1   : > { %v1136_v47 = vperm.slane %v2617_v60, %v2541_v52 }
 0x1a3   : > { %v1138_v27 = vsel %vm1119_vm11, %v1137_v1, %v1136_v47 }
 0x1a4   : > { %v1147_v6 = vsel %vm3197_vm8, %v1138_v27, %v1146_v24 }
 0x1a8   : > { %v2645_v56 = vpop.xlane.xlu2 %839 }
 0x1a9   : > { %v1140_v59 = vperm.slane %v2645_v56, %v2596_v28 }
 0x1ab   : > { %v1141_v61 = vsel %vm1119_vm11, %v1140_v59, %v1139_v58 }
 0x1ac   : > { %v1148_v62 = vsel %vm3196_vm9, %v1141_v61, %v1147_v6 }
 0x1ad   : > { %v1151_v63 = vsel %vm1150_vm12, %v1148_v62, -inf }
 0x1ae   : > { %1152 = vmax.xlane.f32.xlu0 %v1151_v63 }
 0x1e8   : > { %v870_v3 = vpop.xlane.xlu0 %869 }
 0x1e9   : > { %v873_v4 = vperm.slane %v870_v3, 1  ;;  %v872_v5 = vperm.slane %v870_v3, 0  ;;  %v874_v55 = vperm.slane %v870_v3, 2  ;;  %v876_v31 = vperm.slane %v870_v3, 4 }
 0x1ea   : > { %v875_v34 = vperm.slane %v870_v3, 3  ;;  %v878_v39 = vperm.slane %v870_v3, 6  ;;  %v879_v8 = vperm.slane %v870_v3, 7 }
 0x1eb   : > { %v889_v13 = vsub.f32 %v2535_v33, %v873_v4  ;;  %v888_v35 = vsub.f32 %v2533_v14, %v872_v5  ;;  %v890_v41 = vsub.f32 %v2547_v53, %v874_v55  ;;  %v892_v19 = vsub.f32 %v2556_v11, %v876_v31 }
 0x1ec   : > { %v891_v18 = vsub.f32 %v2537_v12, %v875_v34  ;;  %v877_v33 = vperm.slane %v870_v3, 5  ;;  %v894_v11 = vsub.f32 %v2549_v54, %v878_v39  ;;  %v895_v54 = vsub.f32 %v2566_v2, %v879_v8 }
 0x1ed   : > { %v898_v36 = vmul.f32 1.442695, %v889_v13  ;;  %v896_v37 = vmul.f32 1.442695, %v888_v35  ;;  %v900_v38 = vmul.f32 1.442695, %v890_v41 }
 0x1ee   : > { %v904_v51 = vmul.f32 1.442695, %v892_v19  ;;  %v902_v40 = vmul.f32 1.442695, %v891_v18  ;;  %v893_v12 = vsub.f32 %v2539_v50, %v877_v33  ;;  %v908_v43 = vmul.f32 1.442695, %v894_v11 }
 0x1ef   : > { %1974 = vpow2.f32 %v898_v36  ;;  %v910_v0 = vmul.f32 1.442695, %v895_v54 }
 0x1f0   : > { %1976 = vpow2.f32 %v896_v37  ;;  %v906_v20 = vmul.f32 1.442695, %v893_v12 }
 0x1f1   : > { %1978 = vpow2.f32 %v900_v38 }
 0x1f2   : > { %1980 = vpow2.f32 %v904_v51 }
 0x1f3   : > { %1982 = vpow2.f32 %v902_v40 }
 0x1f4   : > { %1984 = vpow2.f32 %v908_v43 }
 0x1f5   : > { %v2663_v42 = vpop.eup %1974  ;;  %1986 = vpow2.f32 %v906_v20 }
 0x1f6   : > { %v2665_v14 = vpop.eup %1976  ;;  %924 = vperm.xlu2 %1972, %v2663_v42   ;;  %1988 = vpow2.f32 %v910_v0 }
 0x1f7   : > { %v2668_v53 = vpop.eup %1978  ;;  %921 = vperm.xlu1 %1971, %v2665_v14  }
 0x1f8   : > { %927 = vperm.xlu0 %1973, %v2668_v53   ;;  %v2674_v30 = vpop.eup %1980 }
 0x1f9   : > { %v2676_v47 = vpop.eup %1982 }
 0x1fa   : > { %v2681_v48 = vpop.eup %1984 }
 0x1fb   : > { %v2683_v1 = vpop.eup %1986 }
 0x1fc   : > { %v2687_v50 = vpop.eup %1988 }
 0x1fe   : > { %933 = vperm.xlu2 %1972, %v2674_v30  }
 0x1ff   : > { %930 = vperm.xlu1 %1971, %v2676_v47  }
 0x206   : > { %939 = vperm.xlu2 %1972, %v2681_v48  }
 0x207   : > { %936 = vperm.xlu1 %1971, %v2683_v1  }
 0x20f   : > { %942 = vperm.xlu1 %1971, %v2687_v50  }
 0x221   : > { %v2690_v17 = vpop.xlane.xlu0 %1152 }
 0x222   : > { %v1158_v10 = vperm.slane %v2690_v17, 3  ;;  %v1157_v2 = vperm.slane %v2690_v17, 2  ;;  %v1155_v45 = vperm.slane %v2690_v17, 0  ;;  %v1160_v59 = vperm.slane %v2690_v17, 5 }
 0x223   : > { %v1156_v13 = vperm.slane %v2690_v17, 1  ;;  %v1159_v12 = vperm.slane %v2690_v17, 4 }
 0x224   : > { %v1178_v27 = vsub.f32 %v2587_v23, %v1158_v10  ;;  %v1176_v57 = vsub.f32 %v2583_v21, %v1157_v2  ;;  %v1171_v58 = vsub.f32 %v2575_v32, %v1155_v45  ;;  %v1181_v62 = vsub.f32 %v2598_v46, %v1160_v59 }
 0x225   : > { %v1182_v63 = vsub.f32 %v2602_v29, %v1160_v59  ;;  %v1172_v3 = vsub.f32 %v2579_v9, %v1155_v45  ;;  %v1161_v23 = vperm.slane %v2690_v17, 6  ;;  %v1162_v32 = vperm.slane %v2690_v17, 7 }
 0x226   : > { %v1201_v24 = vmul.f32 1.442695, %v1178_v27  ;;  %v1197_v61 = vmul.f32 1.442695, %v1176_v57  ;;  %v1187_v6 = vmul.f32 1.442695, %v1171_v58  ;;  %v1173_v41 = vsub.f32 %v2577_v7, %v1156_v13 }
 0x227   : > { %v1207_v4 = vmul.f32 1.442695, %v1181_v62  ;;  %v1209_v21 = vmul.f32 1.442695, %v1182_v63  ;;  %v1189_v55 = vmul.f32 1.442695, %v1172_v3  ;;  %v1184_v9 = vsub.f32 %v2627_v44, %v1161_v23 }
 0x228   : > { %1990 = vpow2.f32 %v1201_v24  ;;  %v1185_v29 = vsub.f32 %v2639_v49, %v1162_v32  ;;  %v1191_v37 = vmul.f32 1.442695, %v1173_v41  ;;  %v1174_v7 = vsub.f32 %v2585_v22, %v1156_v13 }
 0x229   : > { %1992 = vpow2.f32 %v1197_v61  ;;  %v1213_v31 = vmul.f32 1.442695, %v1184_v9  ;;  %v1175_v39 = vsub.f32 %v2581_v16, %v1157_v2  ;;  %v1177_v22 = vsub.f32 %v2589_v25, %v1158_v10 }
 0x22a   : > { %1994 = vpow2.f32 %v1187_v6  ;;  %v1215_v34 = vmul.f32 1.442695, %v1185_v29  ;;  %v1193_v19 = vmul.f32 1.442695, %v1174_v7  ;;  %v1179_v20 = vsub.f32 %v2591_v26, %v1159_v12 }
 0x22b   : > { %1996 = vpow2.f32 %v1207_v4  ;;  %v1195_v40 = vmul.f32 1.442695, %v1175_v39  ;;  %v1199_v11 = vmul.f32 1.442695, %v1177_v22  ;;  %v1180_v54 = vsub.f32 %v2593_v15, %v1159_v12 }
 0x22c   : > { %1998 = vpow2.f32 %v1209_v21  ;;  %v1203_v8 = vmul.f32 1.442695, %v1179_v20  ;;  %v1183_v10 = vsub.f32 %v2617_v60, %v1161_v23  ;;  %v1186_v15 = vsub.f32 %v2645_v56, %v1162_v32 }
 0x22d   : > { %2000 = vpow2.f32 %v1189_v55  ;;  %v1205_v0 = vmul.f32 1.442695, %v1180_v54 }
 0x22e   : > { %v2704_v5 = vpop.eup %1990  ;;  %2002 = vpow2.f32 %v1213_v31  ;;  %v1211_v2 = vmul.f32 1.442695, %v1183_v10  ;;  %v1217_v57 = vmul.f32 1.442695, %v1186_v15 }
 0x22f   : > { %v2707_v35 = vpop.eup %1992  ;;  %1257 = vperm.xlu0 %1973, %v2704_v5   ;;  %2004 = vpow2.f32 %v1215_v34 }
 0x230   : > { %v2710_v46 = vpop.eup %1994  ;;  %1251 = vperm.xlu2 %1972, %v2707_v35   ;;  %2006 = vpow2.f32 %v1191_v37 }
 0x231   : > { %1236 = vperm.xlu1 %1971, %v2710_v46   ;;  %v2719_v36 = vpop.eup %1996  ;;  %2008 = vpow2.f32 %v1193_v19 }
 0x232   : > { %v2721_v38 = vpop.eup %1998  ;;  %2010 = vpow2.f32 %v1195_v40 }
 0x233   : > { %v2724_v44 = vpop.eup %2000  ;;  %2012 = vpow2.f32 %v1199_v11 }
 0x234   : > { %v2729_v49 = vpop.eup %2002  ;;  %2014 = vpow2.f32 %v1203_v8 }
 0x235   : > { %v2731_v18 = vpop.eup %2004  ;;  %2016 = vpow2.f32 %v1205_v0 }
 0x236   : > { %v2734_v51 = vpop.eup %2006  ;;  %2018 = vpow2.f32 %v1211_v2 }
 0x237   : > { %1266 = vperm.xlu0 %1973, %v2719_v36   ;;  %v2739_v33 = vpop.eup %2008  ;;  %2020 = vpow2.f32 %v1217_v57 }
 0x238   : > { %1269 = vperm.xlu2 %1972, %v2721_v38   ;;  %v2744_v43 = vpop.eup %2010 }
 0x239   : > { %1239 = vperm.xlu1 %1971, %v2724_v44   ;;  %v2748_v16 = vpop.eup %2012 }
 0x23a   : > { %v2752_v25 = vpop.eup %2014 }
 0x23b   : > { %v2756_v45 = vpop.eup %2016 }
 0x23c   : > { %v2762_v58 = vpop.eup %2018 }
 0x23d   : > { %v2768_v63 = vpop.eup %2020 }
 0x23f   : > { %1275 = vperm.xlu0 %1973, %v2729_v49  }
 0x240   : > { %1278 = vperm.xlu2 %1972, %v2731_v18  }
 0x241   : > { %1242 = vperm.xlu1 %1971, %v2734_v51  }
 0x249   : > { %1245 = vperm.xlu1 %1971, %v2739_v33  }
 0x250   : > { %v925_v27 = vpop.permute.xlu2 %924 }
 0x251   : > { %1248 = vperm.xlu1 %1971, %v2744_v43   ;;  %v945_v6 = vperm.slane %v925_v27, %v2541_v52 }
 0x258   : > { %v934_v60 = vpop.permute.xlu2 %933 }
 0x259   : > { %1254 = vperm.xlu1 %1971, %v2748_v16   ;;  %v948_v32 = vperm.slane %v934_v60, %v2541_v52 }
 0x260   : > { %v940_v55 = vpop.permute.xlu2 %939 }
 0x261   : > { %1260 = vperm.xlu1 %1971, %v2752_v25   ;;  %v950_v29 = vperm.slane %v940_v55, %v2541_v52 }
 0x269   : > { %1263 = vperm.xlu1 %1971, %v2756_v45   ;;  %v922_v26 = vpop.permute.xlu1 %921 }
 0x26a   : > { %v928_v24 = vpop.permute.xlu0 %927  ;;  %v944_v61 = vperm.slane %v922_v26, %v2541_v52 }
 0x26b   : > { %v946_v62 = vperm.slane %v928_v24, %v2541_v52 }
 0x26c   : > { %v952_v17 = vsel %vm408_vm2, %v945_v6, %v944_v61 }
 0x26d   : > { %v953_v4 = vsel %vm410_vm4, %v946_v62, %v952_v17 }
 0x271   : > { %1272 = vperm.xlu1 %1971, %v2762_v58   ;;  %v931_v59 = vpop.permute.xlu1 %930 }
 0x272   : > { %v947_v56 = vperm.slane %v931_v59, %v2541_v52 }
 0x274   : > { %v954_v23 = vsel %vm412_vm5, %v947_v56, %v953_v4 }
 0x275   : > { %v955_v13 = vsel %vm414_vm6, %v948_v32, %v954_v23 }
 0x279   : > { %1281 = vperm.xlu1 %1971, %v2768_v63   ;;  %v937_v3 = vpop.permute.xlu1 %936 }
 0x27a   : > { %v949_v21 = vperm.slane %v937_v3, %v2541_v52 }
 0x27c   : > { %v956_v9 = vsel %vm3200_vm7, %v949_v21, %v955_v13 }
 0x27d   : > { %v957_v34 = vsel %vm3197_vm8, %v950_v29, %v956_v9 }
 0x281   : > { %v943_v41 = vpop.permute.xlu1 %942 }
 0x282   : > { %v951_v31 = vperm.slane %v943_v41, %v2541_v52 }
 0x284   : > { %v958_v37 = vsel %vm3196_vm9, %v951_v31, %v957_v34 }
 0x285   : > { %v960_v7 = vsel %vm867_vm10, %v958_v37, 0.0 }
 0x286   : > { %961 = vadd.xlane.f32.xlu2 %v960_v7 }
 0x28a   : > { %v1252_v54 = vpop.permute.xlu2 %1251 }
 0x28b   : > { %v1290_v60 = vperm.slane %v1252_v54, %v2596_v28 }
 0x292   : > { %v1270_v2 = vpop.permute.xlu2 %1269 }
 0x293   : > { %v1299_v37 = vperm.slane %v1270_v2, %v2596_v28 }
 0x29a   : > { %v1279_v41 = vpop.permute.xlu2 %1278 }
 0x2a1   : > { %v1258_v20 = vpop.permute.xlu0 %1257 }
 0x2a2   : > { %v1293_v6 = vperm.slane %v1258_v20, %v2596_v28 }
 0x2a3   : > { %v1237_v19 = vpop.permute.xlu1 %1236 }
 0x2a4   : > { %v1283_v62 = vperm.slane %v1237_v19, %v2541_v52 }
 0x2a9   : > { %v1267_v10 = vpop.permute.xlu0 %1266 }
 0x2aa   : > { %v1298_v9 = vperm.slane %v1267_v10, %v2541_v52 }
 0x2ab   : > { %v1240_v39 = vpop.permute.xlu1 %1239 }
 0x2ac   : > { %v1284_v15 = vperm.slane %v1240_v39, %v2596_v28 }
 0x2ae   : > { %v1285_v4 = vsel %vm1119_vm11, %v1284_v15, %v1283_v62 }
 0x2b1   : > { %v1276_v23 = vpop.permute.xlu0 %1275 }
 0x2b2   : > { %v1302_v31 = vperm.slane %v1276_v23, %v2596_v28 }
 0x2b3   : > { %v1243_v40 = vpop.permute.xlu1 %1242 }
 0x2b4   : > { %v1286_v57 = vperm.slane %v1243_v40, %v2541_v52  ;;  %v1304_v40 = vperm.slane %v1279_v41, %v2541_v52 }
 0x2bb   : > { %v1246_v22 = vpop.permute.xlu1 %1245 }
 0x2bc   : > { %v1287_v26 = vperm.slane %v1246_v22, %v2596_v28  ;;  %v1300_v22 = vsel %vm1119_vm11, %v1299_v37, %v1298_v9 }
 0x2be   : > { %v1288_v17 = vsel %vm1119_vm11, %v1287_v26, %v1286_v57 }
 0x2bf   : > { %v1307_v32 = vsel %vm408_vm2, %v1288_v17, %v1285_v4 }
 0x2c3   : > { %v1249_v11 = vpop.permute.xlu1 %1248 }
 0x2c4   : > { %v1289_v27 = vperm.slane %v1249_v11, %v2541_v52 }
 0x2c6   : > { %v1291_v56 = vsel %vm1119_vm11, %v1290_v60, %v1289_v27 }
 0x2c7   : > { %v1308_v29 = vsel %vm410_vm4, %v1291_v56, %v1307_v32 }
 0x2cb   : > { %v1255_v12 = vpop.permute.xlu1 %1254 }
 0x2cc   : > { %v1292_v59 = vperm.slane %v1255_v12, %v2541_v52 }
 0x2ce   : > { %v1294_v21 = vsel %vm1119_vm11, %v1293_v6, %v1292_v59 }
 0x2cf   : > { %v1309_v34 = vsel %vm412_vm5, %v1294_v21, %v1308_v29 }
 0x2d3   : > { %v1261_v8 = vpop.permute.xlu1 %1260 }
 0x2d4   : > { %v1295_v3 = vperm.slane %v1261_v8, %v2541_v52 }
 0x2db   : > { %v1264_v0 = vpop.permute.xlu1 %1263 }
 0x2dc   : > { %v1296_v24 = vperm.slane %v1264_v0, %v2596_v28 }
 0x2de   : > { %v1297_v55 = vsel %vm1119_vm11, %v1296_v24, %v1295_v3 }
 0x2df   : > { %v1310_v7 = vsel %vm414_vm6, %v1297_v55, %v1309_v34 }
 0x2e0   : > { %v1311_v12 = vsel %vm3200_vm7, %v1300_v22, %v1310_v7 }
 0x2e3   : > { %v1273_v61 = vpop.permute.xlu1 %1272 }
 0x2e4   : > { %v1301_v13 = vperm.slane %v1273_v61, %v2541_v52 }
 0x2e6   : > { %v1303_v19 = vsel %vm1119_vm11, %v1302_v31, %v1301_v13 }
 0x2e7   : > { %v1312_v8 = vsel %vm3197_vm8, %v1303_v19, %v1311_v12 }
 0x2eb   : > { %v1282_v39 = vpop.permute.xlu1 %1281 }
 0x2ec   : > { %v1305_v11 = vperm.slane %v1282_v39, %v2596_v28 }
 0x2ee   : > { %v1306_v20 = vsel %vm1119_vm11, %v1305_v11, %v1304_v40 }
 0x2ef   : > { %v1313_v54 = vsel %vm3196_vm9, %v1306_v20, %v1312_v8 }
 0x2f0   : > { %v1315_v0 = vsel %vm1150_vm12, %v1313_v54, 0.0 }
 0x2f1   : > { %1316 = vadd.xlane.f32.xlu0 %v1315_v0 }
 0x2f9   : > { %v962_v10 = vpop.xlane.xlu2 %961 }
 0x2fa   : > { %v964_v2 = vperm.slane %v962_v10, 0  ;;  %v965_v26 = vperm.slane %v962_v10, 1  ;;  %v2816_v27 = vperm.slane %v962_v10, 2  ;;  %v2818_v52 = vperm.slane %v962_v10, 3 }
 0x2fb   : > { %v2820_v15 = vperm.slane %v962_v10, 4  ;;  %v2822_v28 = vperm.slane %v962_v10, 5  ;;  %v2828_v61 = vperm.slane %v962_v10, 7  ;;  %v2830_v17 = vperm.slane %v962_v10, 6 }
 0x2fc   : > { %2022 = vrcp.f32 %v964_v2  ;;  %v1004_v57 = vand.u32 2147483647, %v965_v26  ;;  %v1006_v59 = vand.u32 2147483648, %v965_v26  ;;  %v989_v60 = vand.u32 2147483647, %v964_v2 }
 0x2fd   : > { %2024 = vrcp.f32 %v965_v26  ;;  %v991_v6 = vand.u32 2147483648, %v964_v2  ;;  %vm1000_vm13 = vweird.f32 %v965_v26  ;;  %vm985_vm15 = vweird.f32 %v964_v2 }
 0x2fe   : > { %2026 = vrcp.f32 %v2816_v27  ;;  %vm2834_vm14 = vcmp.eq.f32.partialorder %v1004_v57, 8.507059e+37  ;;  %v1007_v32 = vor.u32 1.1754944e-38, %v1006_v59  ;;  %vm2840_vm10 = vcmp.eq.f32.partialorder %v989_v60, 8.507059e+37 }
 0x2ff   : > { %2028 = vrcp.f32 %v2818_v52  ;;  %v992_v31 = vor.u32 1.1754944e-38, %v991_v6  ;;  %v1036_v20 = vand.u32 2147483648, %v2818_v52  ;;  %v1021_v54 = vand.u32 2147483648, %v2816_v27 }
 0x300   : > { %2030 = vrcp.f32 %v2820_v15 }
 0x301   : > { %2032 = vrcp.f32 %v2822_v28 }
 0x302   : > { %v2023_v24 = vpop.eup %2022  ;;  %2034 = vrcp.f32 %v2828_v61 }
 0x303   : > { %v2025_v62 = vpop.eup %2024  ;;  %v981_v56 = vmul.f32 %v2023_v24, %v964_v2  ;;  %vm986_vm11 = vweird.f32 %v2023_v24  ;;  %2036 = vrcp.f32 %v2830_v17 }
 0x304   : > { %v2832_v3 = vpop.eup %2026  ;;  %v996_v4 = vmul.f32 %v2025_v62, %v965_v26  ;;  %vm1001_vm12 = vweird.f32 %v2025_v62  ;;  %vm987_vm9 = vmor %vm985_vm15, %vm986_vm11  ;;  %vm1045_vm11 = vweird.f32 %v2820_v15 }
 0x305   : > { %v2838_v21 = vpop.eup %2028  ;;  %v982_v55 = vsub.f32 1.0, %v981_v56  ;;  %v1011_v9 = vmul.f32 %v2832_v3, %v2816_v27  ;;  %vm1016_vm8 = vweird.f32 %v2832_v3  ;;  %vm1002_vm0 = vmor %vm1000_vm13, %vm1001_vm12  ;;  %vm1030_vm13 = vweird.f32 %v2818_v52 }
 0x306   : > { %v2846_v29 = vpop.eup %2030  ;;  %v997_v41 = vsub.f32 1.0, %v996_v4  ;;  %v1026_v34 = vmul.f32 %v2838_v21, %v2818_v52  ;;  %vm1031_vm3 = vweird.f32 %v2838_v21  ;;  %vm1060_vm12 = vweird.f32 %v2822_v28 }
 0x307   : > { %v2851_v37 = vpop.eup %2032  ;;  %v983_v7 = vmul.f32 %v2023_v24, %v982_v55  ;;  %v1012_v19 = vsub.f32 1.0, %v1011_v9  ;;  %v1041_v39 = vmul.f32 %v2846_v29, %v2820_v15  ;;  %vm1032_vm15 = vmor %vm1030_vm13, %vm1031_vm3  ;;  %vm1046_vm3 = vweird.f32 %v2846_v29 }
 0x308   : > { %v998_v40 = vmul.f32 %v2025_v62, %v997_v41  ;;  %v1027_v22 = vsub.f32 1.0, %v1026_v34  ;;  %v1056_v11 = vmul.f32 %v2851_v37, %v2822_v28  ;;  %v2867_v6 = vpop.eup %2034 }
 0x309   : > { %v984_v12 = vadd.f32 %v2023_v24, %v983_v7  ;;  %v1013_v8 = vmul.f32 %v2832_v3, %v1012_v19  ;;  %v1042_v60 = vsub.f32 1.0, %v1041_v39  ;;  %v1066_v7 = vand.u32 2147483648, %v2822_v28 }
 0x30a   : > { %v999_v0 = vadd.f32 %v2025_v62, %v998_v40  ;;  %v1028_v10 = vmul.f32 %v2838_v21, %v1027_v22  ;;  %v1057_v55 = vsub.f32 1.0, %v1056_v11  ;;  %v1051_v40 = vand.u32 2147483648, %v2820_v15 }
 0x30b   : > { %v988_v57 = vsel %vm987_vm9, %v2023_v24, %v984_v12  ;;  %v1014_v59 = vadd.f32 %v2832_v3, %v1013_v8  ;;  %vm1015_vm9 = vweird.f32 %v2816_v27  ;;  %v1019_v24 = vand.u32 2147483647, %v2816_v27 }
 0x30c   : > { %v1003_v56 = vsel %vm1002_vm0, %v2025_v62, %v999_v0  ;;  %v993_v4 = vsel %vm2840_vm10, %v992_v31, %v988_v57  ;;  %v1029_v2 = vadd.f32 %v2838_v21, %v1028_v10  ;;  %v1034_v62 = vand.u32 2147483647, %v2818_v52  ;;  %vm1017_vm0 = vmor %vm1015_vm9, %vm1016_vm8 }
 0x30d   : > { %v1008_v9 = vsel %vm2834_vm14, %v1007_v32, %v1003_v56  ;;  %v994_v26 = vmul.f32 %v2665_v14, %v993_v4  ;;  %v1018_v23 = vsel %vm1017_vm0, %v2832_v3, %v1014_v59  ;;  %v1043_v14 = vmul.f32 %v2846_v29, %v1042_v60  ;;  %v2886_v32 = vpop.eup %2036  ;;  %vm1047_vm9 = vmor %vm1045_vm11, %vm1046_vm3 }
 0x30e   : > { %v1009_v41 = vmul.f32 %v2663_v42, %v1008_v9  ;;  %v1033_v42 = vsel %vm1032_vm15, %v2838_v21, %v1029_v2  ;;  %v1022_v27 = vor.u32 1.1754944e-38, %v1021_v54  ;;  %v1058_v13 = vmul.f32 %v2851_v37, %v1057_v55 }
 0x30f   : > { %1465 = vperm.xlu2 %1972, %v994_v26   ;;  %v1086_v52 = vmul.f32 %v2867_v6, %v2828_v61  ;;  %v1037_v31 = vor.u32 1.1754944e-38, %v1036_v20  ;;  %vm1020_vm8 = vcmp.eq.f32.partialorder %v1019_v24, 8.507059e+37  ;;  %vm1035_vm14 = vcmp.eq.f32.partialorder %v1034_v62, 8.507059e+37 }
 0x310   : > { %1470 = vperm.xlu1 %1971, %v1009_v41   ;;  %v1023_v34 = vsel %vm1020_vm8, %v1022_v27, %v1018_v23  ;;  %v1044_v19 = vadd.f32 %v2846_v29, %v1043_v14  ;;  %v1071_v21 = vmul.f32 %v2886_v32, %v2830_v17  ;;  %v1059_v39 = vadd.f32 %v2851_v37, %v1058_v13 }
 0x311   : > { %v1038_v3 = vsel %vm1035_vm14, %v1037_v31, %v1033_v42  ;;  %vm1061_vm10 = vweird.f32 %v2851_v37  ;;  %v1087_v22 = vsub.f32 1.0, %v1086_v52  ;;  %v1024_v11 = vmul.f32 %v2668_v53, %v1023_v34 }
 0x312   : > { %v1049_v12 = vand.u32 2147483647, %v2820_v15  ;;  %v1072_v20 = vsub.f32 1.0, %v1071_v21  ;;  %v1039_v8 = vmul.f32 %v2676_v47, %v1038_v3  ;;  %v1064_v54 = vand.u32 2147483647, %v2822_v28  ;;  %vm1062_vm13 = vmor %vm1060_vm12, %vm1061_vm10 }
 0x313   : > { %v1048_v0 = vsel %vm1047_vm9, %v2846_v29, %v1044_v19  ;;  %v1063_v53 = vsel %vm1062_vm13, %v2851_v37, %v1059_v39  ;;  %v1052_v57 = vor.u32 1.1754944e-38, %v1051_v40  ;;  %v1088_v15 = vmul.f32 %v2867_v6, %v1087_v22 }
 0x314   : > { %v1073_v10 = vmul.f32 %v2886_v32, %v1072_v20  ;;  %v1067_v59 = vor.u32 1.1754944e-38, %v1066_v7  ;;  %vm1050_vm0 = vcmp.eq.f32.partialorder %v1049_v12, 8.507059e+37  ;;  %vm1065_vm15 = vcmp.eq.f32.partialorder %v1064_v54, 8.507059e+37 }
 0x315   : > { %v1053_v47 = vsel %vm1050_vm0, %v1052_v57, %v1048_v0  ;;  %vm1076_vm8 = vweird.f32 %v2886_v32  ;;  %v1089_v56 = vadd.f32 %v2867_v6, %v1088_v15  ;;  %vm1091_vm14 = vweird.f32 %v2867_v6 }
 0x316   : > { %v1068_v60 = vsel %vm1065_vm15, %v1067_v59, %v1063_v53  ;;  %v1074_v28 = vadd.f32 %v2886_v32, %v1073_v10  ;;  %v1081_v29 = vand.u32 2147483648, %v2830_v17  ;;  %v1054_v37 = vmul.f32 %v2674_v30, %v1053_v47 }
 0x317   : > { %1475 = vperm.xlu2 %1972, %v1024_v11   ;;  %v1096_v4 = vand.u32 2147483648, %v2828_v61  ;;  %vm1075_vm3 = vweird.f32 %v2830_v17  ;;  %v1079_v2 = vand.u32 2147483647, %v2830_v17  ;;  %v1069_v55 = vmul.f32 %v2683_v1, %v1068_v60 }
 0x318   : > { %1480 = vperm.xlu1 %1971, %v1039_v8   ;;  %vm1090_vm10 = vweird.f32 %v2828_v61  ;;  %v1094_v9 = vand.u32 2147483647, %v2828_v61  ;;  %vm1077_vm11 = vmor %vm1075_vm3, %vm1076_vm8  ;;  %v1082_v24 = vor.u32 1.1754944e-38, %v1081_v29 }
 0x319   : > { %vm1092_vm12 = vmor %vm1090_vm10, %vm1091_vm14  ;;  %v1078_v26 = vsel %vm1077_vm11, %v2886_v32, %v1074_v28  ;;  %v1097_v41 = vor.u32 1.1754944e-38, %v1096_v4  ;;  %vm1080_vm9 = vcmp.eq.f32.partialorder %v1079_v2, 8.507059e+37 }
 0x31a   : > { %v1093_v30 = vsel %vm1092_vm12, %v2867_v6, %v1089_v56  ;;  %vm1095_vm13 = vcmp.eq.f32.partialorder %v1094_v9, 8.507059e+37  ;;  %v1083_v62 = vsel %vm1080_vm9, %v1082_v24, %v1078_v26 }
 0x31b   : > { %v1098_v17 = vsel %vm1095_vm13, %v1097_v41, %v1093_v30  ;;  %v1084_v1 = vmul.f32 %v2681_v48, %v1083_v62  ;;  %v2054_v48 = vld [vmem:[%s2262_s8] sm:$0xff] }
 0x31c   : > { %v1099_v23 = vmul.f32 %v2687_v50, %v1098_v17 }
 0x31f   : > { %1485 = vperm.xlu2 %1972, %v1054_v37  }
 0x320   : > { %1490 = vperm.xlu1 %1971, %v1069_v55   ;;  %v2055_v55 = vld [vmem:[%s2262_s8 + $0x10] sm:$0xff] }
 0x327   : > { %1495 = vperm.xlu2 %1972, %v1084_v1  }
 0x328   : > { %1500 = vperm.xlu1 %1971, %v1099_v23  }
 0x364   : > { %v1317_v61 = vpop.xlane.xlu0 %1316 }
 0x365   : > { %v1319_v14 = vperm.slane %v1317_v61, 0  ;;  %v1320_v42 = vperm.slane %v1317_v61, 1  ;;  %v2926_v32 = vperm.slane %v1317_v61, 2  ;;  %v2928_v27 = vperm.slane %v1317_v61, 4 }
 0x366   : > { %v2930_v6 = vperm.slane %v1317_v61, 6  ;;  %v2933_v52 = vperm.slane %v1317_v61, 3  ;;  %v2937_v21 = vperm.slane %v1317_v61, 5  ;;  %v2939_v39 = vperm.slane %v1317_v61, 7 }
 0x367   : > { %2038 = vrcp.f32 %v1319_v14  ;;  %v1360_v31 = vand.u32 2147483647, %v1320_v42  ;;  %v1362_v34 = vand.u32 2147483648, %v1320_v42  ;;  %v1344_v7 = vand.u32 2147483647, %v1319_v14 }
 0x368   : > { %2040 = vrcp.f32 %v1320_v42  ;;  %v1346_v3 = vand.u32 2147483648, %v1319_v14  ;;  %vm1356_vm0 = vweird.f32 %v1320_v42  ;;  %vm1340_vm15 = vweird.f32 %v1319_v14 }
 0x369   : > { %2042 = vrcp.f32 %v2926_v32  ;;  %v1466_v13 = vpop.permute.xlu2 %1465  ;;  %vm2946_vm8 = vcmp.eq.f32.partialorder %v1360_v31, 8.507059e+37  ;;  %v1363_v54 = vor.u32 1.1754944e-38, %v1362_v34  ;;  %vm2950_vm14 = vcmp.eq.f32.partialorder %v1344_v7, 8.507059e+37 }
 0x36a   : > { %v1503_v50 = vmul.f32 %v2054_v48, %v1466_v13  ;;  %2044 = vrcp.f32 %v2928_v27  ;;  %v1347_v53 = vor.u32 1.1754944e-38, %v1346_v3  ;;  %v1408_v57 = vand.u32 2147483647, %v2928_v27 }
 0x36b   : > { %2046 = vrcp.f32 %v2930_v6  ;;  %v1410_v56 = vand.u32 2147483648, %v2928_v27  ;;  %vm1372_vm3 = vweird.f32 %v2926_v32  ;;  %v1376_v4 = vand.u32 2147483647, %v2926_v32 }
 0x36c   : > { %v1511_v22 = vsel %vm265_vm1, %v1503_v50, 0.0  ;;  %2048 = vrcp.f32 %v2933_v52  ;;  %v1378_v62 = vand.u32 2147483648, %v2926_v32 }
 0x36d   : > { %v2039_v19 = vpop.eup %2038  ;;  %v1512_v47 = vrot.slane %v1511_v22, 4  ;;  %2050 = vrcp.f32 %v2939_v39 }
 0x36e   : > { %v2041_v40 = vpop.eup %2040  ;;  %v1336_v11 = vmul.f32 %v2039_v19, %v1319_v14  ;;  %vm1341_vm10 = vweird.f32 %v2039_v19  ;;  %2052 = vrcp.f32 %v2937_v21 }
 0x36f   : > { %v2943_v12 = vpop.eup %2042  ;;  %v1352_v20 = vmul.f32 %v2041_v40, %v1320_v42  ;;  %vm1357_vm11 = vweird.f32 %v2041_v40  ;;  %v1513_v23 = vadd.f32 %v1512_v47, %v1511_v22  ;;  %vm1342_vm12 = vmor %vm1340_vm15, %vm1341_vm10 }
 0x370   : > { %v1337_v10 = vsub.f32 1.0, %v1336_v11  ;;  %v1368_v15 = vmul.f32 %v2943_v12, %v2926_v32  ;;  %v2957_v59 = vpop.eup %2044  ;;  %vm1358_vm9 = vmor %vm1356_vm0, %vm1357_vm11  ;;  %vm1373_vm13 = vweird.f32 %v2943_v12  ;;  %vm1404_vm0 = vweird.f32 %v2928_v27 }
 0x371   : > { %v1476_v60 = vpop.permute.xlu2 %1475  ;;  %v1353_v28 = vsub.f32 1.0, %v1352_v20  ;;  %v1400_v37 = vmul.f32 %v2957_v59, %v2928_v27  ;;  %v2964_v2 = vpop.eup %2046  ;;  %vm1405_vm7 = vweird.f32 %v2957_v59  ;;  %vm2993_vm15 = vmor %vm1372_vm3, %vm1373_vm13  ;;  %vm1436_vm3 = vweird.f32 %v2930_v6 }
 0x372   : > { %v1338_v29 = vmul.f32 %v2039_v19, %v1337_v10  ;;  %v1505_v9 = vmul.f32 %v2055_v55, %v1476_v60  ;;  %v1369_v30 = vsub.f32 1.0, %v1368_v15  ;;  %v1432_v17 = vmul.f32 %v2964_v2, %v2930_v6  ;;  %v2970_v1 = vpop.eup %2048 }
 0x373   : > { %v1354_v26 = vmul.f32 %v2041_v40, %v1353_v28  ;;  %v1401_v41 = vsub.f32 1.0, %v1400_v37  ;;  %v3003_v27 = vpop.eup %2050  ;;  %v1384_v10 = vmul.f32 %v2970_v1, %v2933_v52  ;;  %v1440_v60 = vand.u32 2147483647, %v2930_v6 }
 0x374   : > { %v1339_v24 = vadd.f32 %v2039_v19, %v1338_v29  ;;  %v1370_v13 = vmul.f32 %v2943_v12, %v1369_v30  ;;  %v1433_v31 = vsub.f32 1.0, %v1432_v17  ;;  %v1525_v34 = vsel %vm265_vm1, %v1505_v9, 0.0  ;;  %v3023_v55 = vpop.eup %2052  ;;  %v2056_v9 = vld [vmem:[%s2262_s8 + $0x20] sm:$0xff] }
 0x375   : > { %v1355_v61 = vadd.f32 %v2041_v40, %v1354_v26  ;;  %v1402_v50 = vmul.f32 %v2957_v59, %v1401_v41  ;;  %v1526_v8 = vrot.slane %v1525_v34, 4  ;;  %v1442_v28 = vand.u32 2147483648, %v2930_v6  ;;  %v2057_v6 = vld [vmem:[%s2262_s8 + $0x8] sm:$0xff] }
 0x376   : > { %v1343_v48 = vsel %vm1342_vm12, %v2039_v19, %v1339_v24  ;;  %vm1437_vm10 = vweird.f32 %v2964_v2  ;;  %vm1389_vm11 = vweird.f32 %v2970_v1  ;;  %v1392_v24 = vand.u32 2147483647, %v2933_v52 }
 0x377   : > { %v1359_v7 = vsel %vm1358_vm9, %v2041_v40, %v1355_v61  ;;  %v1348_v3 = vsel %vm2950_vm14, %v1347_v53, %v1343_v48  ;;  %v1403_v22 = vadd.f32 %v2957_v59, %v1402_v50  ;;  %v1371_v40 = vadd.f32 %v2943_v12, %v1370_v13  ;;  %vm3033_vm12 = vmor %vm1436_vm3, %vm1437_vm10 }
 0x378   : > { %v1364_v14 = vsel %vm2946_vm8, %v1363_v54, %v1359_v7  ;;  %v1350_v42 = vmul.f32 %v2724_v44, %v1348_v3  ;;  %v1349_v19 = vmul.f32 %v2710_v46, %v1348_v3  ;;  %vm2998_vm8 = vmor %vm1404_vm0, %vm1405_vm7  ;;  %v1379_v44 = vor.u32 1.1754944e-38, %v1378_v62 }
 0x379   : > { %v1366_v11 = vmul.f32 %v2739_v33, %v1364_v14  ;;  %v1434_v33 = vmul.f32 %v2964_v2, %v1433_v31  ;;  %v1514_v54 = vrot.slane %v1513_v23, 2  ;;  %v1407_v32 = vsel %vm2998_vm8, %v2957_v59, %v1403_v22  ;;  %v1486_v15 = vpop.permute.xlu2 %1485 }
 0x37a   : > { %1574 = vperm.xlu1 %1971, %v1350_v42   ;;  %1569 = vperm.xlu2 %1972, %v1349_v19   ;;  %v1375_v0 = vsel %vm2993_vm15, %v2943_v12, %v1371_v40  ;;  %vm1409_vm7 = vcmp.eq.f32.partialorder %v1408_v57, 8.507059e+37  ;;  %v1411_v53 = vor.u32 1.1754944e-38, %v1410_v56  ;;  %vm1377_vm14 = vcmp.eq.f32.partialorder %v1376_v4, 8.507059e+37 }
 0x37b   : > { %1584 = vperm.xlu0 %1973, %v1366_v11   ;;  %v1380_v47 = vsel %vm1377_vm14, %v1379_v44, %v1375_v0  ;;  %v1385_v59 = vsub.f32 1.0, %v1384_v10  ;;  %v1527_v29 = vadd.f32 %v1526_v8, %v1525_v34  ;;  %v1435_v12 = vadd.f32 %v2964_v2, %v1434_v33 }
 0x37c   : > { %v3016_v37 = vsel %vm1409_vm7, %v1411_v53, %v1407_v32  ;;  %v1515_v57 = vadd.f32 %v1514_v54, %v1513_v23  ;;  %v1365_v56 = vmul.f32 %v2734_v51, %v1364_v14  ;;  %v1507_v26 = vmul.f32 %v2056_v9, %v1486_v15  ;;  %v2058_v53 = vld [vmem:[%s2262_s8 + $0x18] sm:$0xff] }
 0x37d   : > { %v1386_v4 = vmul.f32 %v2970_v1, %v1385_v59  ;;  %v1381_v30 = vmul.f32 %v2744_v43, %v1380_v47  ;;  %v1394_v41 = vand.u32 2147483648, %v2933_v52  ;;  %v1414_v62 = vmul.f32 %v2756_v45, %v3016_v37 }
 0x37e   : > { %vm1388_vm9 = vweird.f32 %v2933_v52  ;;  %v1448_v43 = vmul.f32 %v3003_v27, %v2939_v39  ;;  %v1528_v23 = vrot.slane %v1527_v29, 2  ;;  %v1439_v45 = vsel %vm3033_vm12, %v2964_v2, %v1435_v12 }
 0x37f   : > { %v1387_v17 = vadd.f32 %v2970_v1, %v1386_v4  ;;  %vm1390_vm13 = vmor %vm1388_vm9, %vm1389_vm11  ;;  %v1395_v52 = vor.u32 1.1754944e-38, %v1394_v41  ;;  %v1539_v31 = vsel %vm265_vm1, %v1507_v26, 0.0  ;;  %v1443_v34 = vor.u32 1.1754944e-38, %v1442_v28 }
 0x380   : > { %v1449_v50 = vsub.f32 1.0, %v1448_v43  ;;  %vm1393_vm0 = vcmp.eq.f32.partialorder %v1392_v24, 8.507059e+37  ;;  %v1516_v7 = vrot.slane %v1515_v57, 1  ;;  %vm1441_vm15 = vcmp.eq.f32.partialorder %v1440_v60, 8.507059e+37 }
 0x381   : > { %v1391_v48 = vsel %vm1390_vm13, %v2970_v1, %v1387_v17  ;;  %v1529_v2 = vadd.f32 %v1528_v23, %v1527_v29  ;;  %v3050_v19 = vsel %vm1441_vm15, %v1443_v34, %v1439_v45  ;;  %v1540_v11 = vrot.slane %v1539_v31, 4 }
 0x382   : > { %1589 = vperm.xlu1 %1971, %v1381_v30   ;;  %1579 = vperm.xlu2 %1972, %v1365_v56   ;;  %v1471_v61 = vpop.permute.xlu1 %1470  ;;  %v1396_v14 = vsel %vm1393_vm0, %v1395_v52, %v1391_v48  ;;  %v1450_v22 = vmul.f32 %v3003_v27, %v1449_v50  ;;  %v1382_v1 = vmul.f32 %v2707_v35, %v1380_v47  ;;  %vm1453_vm8 = vweird.f32 %v3003_v27 }
 0x383   : > { %1614 = vperm.xlu0 %1973, %v1414_v62   ;;  %v1504_v13 = vmul.f32 %v2057_v6, %v1471_v61  ;;  %v1416_v40 = vmul.f32 %v3023_v55, %v2937_v21  ;;  %v1397_v8 = vmul.f32 %v2748_v16, %v1396_v14  ;;  %v1458_v44 = vand.u32 2147483648, %v2939_v39 }
 0x384   : > { %v1451_v46 = vadd.f32 %v3003_v27, %v1450_v22  ;;  %v1445_v33 = vmul.f32 %v2762_v58, %v3050_v19  ;;  %vm1452_vm7 = vweird.f32 %v2939_v39  ;;  %v1456_v35 = vand.u32 2147483647, %v2939_v39 }
 0x385   : > { %v1518_v3 = vsel %vm265_vm1, %v1504_v13, 0.0  ;;  %v1417_v54 = vsub.f32 1.0, %v1416_v40  ;;  %vm3064_vm14 = vmor %vm1452_vm7, %vm1453_vm8  ;;  %v1541_v16 = vadd.f32 %v1540_v11, %v1539_v31  ;;  %v1517_v39 = vadd.f32 %v1516_v7, %v1515_v57 }
 0x386   : > { %v1519_v42 = vrot.slane %v1518_v3, 4  ;;  %v1455_v58 = vsel %vm3064_vm14, %v3003_v27, %v1451_v46  ;;  %v1459_v28 = vor.u32 1.1754944e-38, %v1458_v44  ;;  %v1530_v59 = vrot.slane %v1529_v2, 1 }
 0x387   : > { %v1418_v47 = vmul.f32 %v3023_v55, %v1417_v54  ;;  %vm1457_vm3 = vcmp.eq.f32.partialorder %v1456_v35, 8.507059e+37  ;;  %vm1421_vm10 = vweird.f32 %v3023_v55  ;;  %v1542_v26 = vrot.slane %v1541_v16, 2 }
 0x388   : > { %v1520_v20 = vadd.f32 %v1519_v42, %v1518_v3  ;;  %v1460_v4 = vsel %vm1457_vm3, %v1459_v28, %v1455_v58  ;;  %v1413_v27 = vmul.f32 %v2752_v25, %v3016_v37  ;;  %v1398_v30 = vmul.f32 %v2704_v5, %v1396_v14  ;;  %v2063_v28 = vld [vmem:[%s2324_s27] sm:$0xff] }
 0x389   : > { %v1419_v9 = vadd.f32 %v3023_v55, %v1418_v47  ;;  %v1426_v57 = vand.u32 2147483648, %v2937_v21  ;;  %vm1420_vm11 = vweird.f32 %v2937_v21  ;;  %v1424_v62 = vand.u32 2147483647, %v2937_v21  ;;  %v2062_v47 = vld [vmem:[%s2324_s27 + $0x20] sm:$0xff] }
 0x38a   : > { %v1521_v32 = vrot.slane %v1520_v20, 2  ;;  %1599 = vperm.xlu1 %1971, %v1397_v8   ;;  %1594 = vperm.xlu2 %1972, %v1382_v1   ;;  %v1481_v0 = vpop.permute.xlu1 %1480  ;;  %v1531_v51 = vadd.f32 %v1530_v59, %v1529_v2  ;;  %v1462_v17 = vmul.f32 %v2768_v63, %v1460_v4  ;;  %vm3085_vm12 = vmor %vm1420_vm11, %vm1421_vm10  ;;  %v1543_v21 = vadd.f32 %v1542_v26, %v1541_v16  ;;  %v2059_v63 = vld [vmem:[%s2262_s8 + $0x28] sm:$0xff]  ;;  %v2060_v16 = vld [vmem:[%s2324_s27 + $0x18] sm:$0x3] }
 0x38b   : > { %1629 = vperm.xlu0 %1973, %v1445_v33   ;;  %v1506_v15 = vmul.f32 %v2058_v53, %v1481_v0  ;;  %v1423_v23 = vsel %vm3085_vm12, %v3023_v55, %v1419_v9  ;;  %v1427_v6 = vor.u32 1.1754944e-38, %v1426_v57  ;;  %vm1425_vm9 = vcmp.eq.f32.partialorder %v1424_v62, 8.507059e+37  ;;  %v2066_v9 = vld [vmem:[%s2324_s27 + $0x28] sm:$0x3] }
 0x38c   : > { %v1522_v60 = vadd.f32 %v1521_v32, %v1520_v20  ;;  %v1544_v34 = vrot.slane %v1543_v21, 1  ;;  %v1461_v20 = vmul.f32 %v2731_v18, %v1460_v4  ;;  %v1446_v8 = vmul.f32 %v2729_v49, %v3050_v19 }
 0x38d   : > { %v1532_v29 = vsel %vm265_vm1, %v1506_v15, 0.0  ;;  %v1428_v52 = vsel %vm1425_vm9, %v1427_v6, %v1423_v23  ;;  %vm3221_vm13 = vcmask 1045509   ;;  %v2061_v15 = vld [vmem:[%s2324_s27 + $0x8] sm:$0x3]  ;;  %vm3222_vm0 = vcmask 386048   ;;  %v2069_v6 = vld [vmem:[%s2324_s27 + $0x60] sm:$0xff] }
 0x38e   : > { %v1523_v12 = vrot.slane %v1522_v60, 1  ;;  %v1533_v56 = vrot.slane %v1532_v29, 4  ;;  %v1430_v14 = vmul.f32 %v2721_v38, %v1428_v52  ;;  %v1429_v55 = vmul.f32 %v2719_v36, %v1428_v52  ;;  %v3106_v38 = vpop.permute.xlu2 %1495  ;;  %vm3223_vm15 = vmmov %vm3222_vm0 }
 0x38f   : > { %v1545_v22 = vadd.f32 %v1544_v34, %v1543_v21  ;;  %vm3224_vm8 = vcmask 392192   ;;  %vm3228_vm10 = vmmov %vm3222_vm0  ;;  %v2071_v34 = vld [vmem:[%s2324_s27 + $0x40] sm:$0xff] }
 0x390   : > { %v1524_v24 = vadd.f32 %v1523_v12, %v1522_v60  ;;  %v1534_v41 = vadd.f32 %v1533_v56, %v1532_v29  ;;  %v2064_v29 = vld [vmem:[%s2324_s27 + $0x10] sm:$0xff]  ;;  %vm3225_vm7 = vmmov %vm3224_vm8 }
 0x391   : > { %v2065_v56 = vld [vmem:[%s2324_s27 + $0x30] sm:$0xff]  ;;  %vm3226_vm14 = vmmov %vm3225_vm7 }
 0x392   : > { %v1743_v5 = vsel %vm408_vm2, %v1524_v24, %v1517_v39  ;;  %v1535_v25 = vrot.slane %v1534_v41, 2  ;;  %1609 = vperm.xlu1 %1971, %v1413_v27   ;;  %1604 = vperm.xlu2 %1972, %v1398_v30   ;;  %v1491_v37 = vpop.permute.xlu1 %1490  ;;  %v2067_v30 = vld [vmem:[%s2324_s27 + $0x38] sm:$0x3]  ;;  %vm3227_vm3 = vmmov %vm3225_vm7 }
 0x393   : > { %v1744_v61 = vsel %vm410_vm4, %v1531_v51, %v1743_v5  ;;  %1644 = vperm.xlu0 %1973, %v1462_v17   ;;  %v1508_v45 = vmul.f32 %v2059_v63, %v1491_v37  ;;  %vm3229_vm11 = vmmov %vm3222_vm0 }
 0x394   : > { %v1536_v13 = vadd.f32 %v1535_v25, %v1534_v41  ;;  %vm3230_vm12 = vmmov %vm3222_vm0 }
 0x395   : > { %v1546_v48 = vsel %vm265_vm1, %v1508_v45, 0.0  ;;  %vm3231_vm9 = vmmov %vm3227_vm3 }
 0x396   : > { %v1537_v50 = vrot.slane %v1536_v13, 1  ;;  %v1547_v31 = vrot.slane %v1546_v48, 4 }
 0x398   : > { %v1538_v7 = vadd.f32 %v1537_v50, %v1536_v13  ;;  %v1548_v3 = vadd.f32 %v1547_v31, %v1546_v48  ;;  %v2070_v48 = vld [vmem:[%s2324_s27 + $0x68] sm:$0x3] }
 0x39a   : > { %v1745_v2 = vsel %vm412_vm5, %v1538_v7, %v1744_v61  ;;  %v1549_v42 = vrot.slane %v1548_v3, 2  ;;  %1624 = vperm.xlu1 %1971, %v1430_v14   ;;  %1619 = vperm.xlu2 %1972, %v1429_v55   ;;  %v3108_v35 = vpop.permute.xlu1 %1500  ;;  %v2068_v61 = vld [vmem:[%s2324_s27 + $0x48] sm:$0x3] }
 0x39b   : > { %v1746_v40 = vsel %vm414_vm6, %v1545_v22, %v1745_v2 }
 0x39c   : > { %v1550_v11 = vadd.f32 %v1549_v42, %v1548_v3 }
 0x39e   : > { %v1551_v1 = vrot.slane %v1550_v11, 1 }
 0x3a0   : > { %v1552_v46 = vadd.f32 %v1551_v1, %v1550_v11 }
 0x3a2   : > { %1639 = vperm.xlu1 %1971, %v1461_v20   ;;  %1634 = vperm.xlu2 %1972, %v1446_v8   ;;  %v3104_v36 = vsel %vm3221_vm13, %v1552_v46, %v1746_v40  ;;  %vm3232_vm13 = vmmov %vm3227_vm3 }
 0x3d4   : > { %v1570_v44 = vpop.permute.xlu2 %1569 }
 0x3d5   : > { %v1647_v59 = vmul.f32 %v2063_v28, %v1570_v44  ;;  %v2072_v44 = vld [vmem:[%s2324_s27 + $0x50] sm:$0xff] }
 0x3d7   : > { %v1663_v62 = vsel %vm3225_vm7, %v1647_v59, 0.0  ;;  %vm3235_vm7 = vmmov %vm3222_vm0 }
 0x3dc   : > { %v1580_v33 = vpop.permute.xlu2 %1579 }
 0x3dd   : > { %v1649_v12 = vmul.f32 %v2064_v29, %v1580_v33 }
 0x3df   : > { %v1672_v51 = vsel %vm3226_vm14, %v1649_v12, 0.0  ;;  %vm3236_vm14 = vmmov %vm3227_vm3 }
 0x3e4   : > { %v1595_v18 = vpop.permute.xlu2 %1594 }
 0x3e5   : > { %v1652_v26 = vmul.f32 %v2066_v9, %v1595_v18 }
 0x3e7   : > { %v1682_v25 = vsel %vm3228_vm10, %v1652_v26, 0.0  ;;  %vm3238_vm10 = vcmask 1046534  }
 0x3ec   : > { %v1575_v54 = vpop.permute.xlu1 %1574  ;;  %v1605_v19 = vpop.permute.xlu2 %1604 }
 0x3ed   : > { %v1585_v49 = vpop.permute.xlu0 %1584  ;;  %v1648_v58 = vmul.f32 %v2061_v15, %v1575_v54  ;;  %v1654_v57 = vmul.f32 %v2067_v30, %v1605_v19 }
 0x3ee   : > { %v1650_v53 = vmul.f32 %v2060_v16, %v1585_v49 }
 0x3ef   : > { %v1664_v24 = vsel %vm3223_vm15, %v1648_v58, 0.0  ;;  %v1691_v21 = vsel %vm3229_vm11, %v1654_v57, 0.0  ;;  %vm3233_vm15 = vmmov %vm3227_vm3 }
 0x3f0   : > { %v1673_v27 = vsel %vm3222_vm0, %v1650_v53, 0.0  ;;  %v1665_v23 = vadd.f32 %v1664_v24, %v1663_v62 }
 0x3f1   : > { %v1674_v37 = vadd.f32 %v1673_v27, %v1672_v51  ;;  %v2074_v27 = vld [vmem:[%s2324_s27 + $0x78] sm:$0x3]  ;;  %v2075_v51 = vld [vmem:[%s2324_s27 + $0x70] sm:$0xff] }
 0x3f2   : > { %v1666_v14 = vrot.slane %v1665_v23, 4 }
 0x3f3   : > { %v1675_v3 = vrot.slane %v1674_v37, 4 }
 0x3f4   : > { %v1590_v32 = vpop.permute.xlu1 %1589  ;;  %v1620_v10 = vpop.permute.xlu2 %1619  ;;  %v1667_v8 = vadd.f32 %v1666_v14, %v1665_v23 }
 0x3f5   : > { %v1615_v0 = vpop.permute.xlu0 %1614  ;;  %v1651_v39 = vmul.f32 %v2062_v47, %v1590_v32  ;;  %v1676_v20 = vadd.f32 %v1675_v3, %v1674_v37  ;;  %v1657_v33 = vmul.f32 %v2072_v44, %v1620_v10 }
 0x3f6   : > { %v1656_v63 = vmul.f32 %v2068_v61, %v1615_v0  ;;  %v2073_v0 = vld [vmem:[%s2324_s27 + $0x58] sm:$0x3]  ;;  %v1668_v15 = vrot.slane %v1667_v8, 2 }
 0x3f7   : > { %v1681_v41 = vsel %vm3224_vm8, %v1651_v39, 0.0  ;;  %v1677_v53 = vrot.slane %v1676_v20, 2  ;;  %v1708_v58 = vsel %vm3233_vm15, %v1657_v33, 0.0  ;;  %vm3234_vm8 = vmmov %vm3222_vm0 }
 0x3f8   : > { %v1683_v45 = vadd.f32 %v1682_v25, %v1681_v41  ;;  %v1700_v55 = vsel %vm3230_vm12, %v1656_v63, 0.0 }
 0x3f9   : > { %v1678_v12 = vadd.f32 %v1677_v53, %v1676_v20 }
 0x3fa   : > { %v1684_v2 = vrot.slane %v1683_v45, 4 }
 0x3fc   : > { %v1600_v60 = vpop.permute.xlu1 %1599  ;;  %v1635_v43 = vpop.permute.xlu2 %1634  ;;  %v1685_v18 = vadd.f32 %v1684_v2, %v1683_v45 }
 0x3fd   : > { %v1653_v4 = vmul.f32 %v2065_v56, %v1600_v60  ;;  %v1630_v17 = vpop.permute.xlu0 %1629  ;;  %v1660_v52 = vmul.f32 %v2070_v48, %v1635_v43  ;;  %v1669_v56 = vadd.f32 %v1668_v15, %v1667_v8  ;;  %v1679_v43 = vrot.slane %v1678_v12, 1 }
 0x3fe   : > { %v1659_v13 = vmul.f32 %v2069_v6, %v1630_v17  ;;  %v1686_v47 = vrot.slane %v1685_v18, 2 }
 0x3ff   : > { %v1690_v5 = vsel %vm3227_vm3, %v1653_v4, 0.0  ;;  %v1718_v11 = vsel %vm3222_vm0, %v1660_v52, 0.0  ;;  %v1680_v48 = vadd.f32 %v1679_v43, %v1678_v12  ;;  %vm3237_vm3 = vcmask 1045509  }
 0x400   : > { %v1692_v50 = vadd.f32 %v1691_v21, %v1690_v5  ;;  %v1717_v22 = vsel %vm3232_vm13, %v1659_v13, 0.0  ;;  %v1687_v9 = vadd.f32 %v1686_v47, %v1685_v18  ;;  %v1670_v5 = vrot.slane %v1669_v56, 1 }
 0x401   : > { %v1719_v54 = vadd.f32 %v1718_v11, %v1717_v22 }
 0x402   : > { %v1693_v1 = vrot.slane %v1692_v50, 4  ;;  %v1688_v37 = vrot.slane %v1687_v9, 1  ;;  %v1671_v52 = vadd.f32 %v1670_v5, %v1669_v56 }
 0x403   : > { %v1720_v39 = vrot.slane %v1719_v54, 4 }
 0x404   : > { %v1610_v31 = vpop.permute.xlu1 %1609  ;;  %v1694_v49 = vadd.f32 %v1693_v1, %v1692_v50  ;;  %v1759_v2 = vsel %vm408_vm2, %v1680_v48, %v1671_v52  ;;  %vm3239_vm2 = vcmask 1047559  }
 0x405   : > { %v1655_v7 = vmul.f32 %v2071_v34, %v1610_v31  ;;  %v1645_v59 = vpop.permute.xlu0 %1644  ;;  %v1721_v26 = vadd.f32 %v1720_v39, %v1719_v54  ;;  %v1689_v34 = vadd.f32 %v1688_v37, %v1687_v9 }
 0x406   : > { %v1695_v28 = vrot.slane %v1694_v49, 2  ;;  %v1662_v30 = vmul.f32 %v2074_v27, %v1645_v59 }
 0x407   : > { %v1699_v42 = vsel %vm3231_vm9, %v1655_v7, 0.0  ;;  %v1722_v23 = vrot.slane %v1721_v26, 2  ;;  %v1760_v1 = vsel %vm410_vm4, %v1689_v34, %v1759_v2  ;;  %vm3240_vm4 = vmmov %vm3238_vm10 }
 0x408   : > { %v1701_v40 = vadd.f32 %v1700_v55, %v1699_v42  ;;  %v1696_v57 = vadd.f32 %v1695_v28, %v1694_v49  ;;  %v1727_v21 = vsel %vm3235_vm7, %v1662_v30, 0.0 }
 0x409   : > { %v1723_v7 = vadd.f32 %v1722_v23, %v1721_v26 }
 0x40a   : > { %v1702_v46 = vrot.slane %v1701_v40, 4  ;;  %v1697_v63 = vrot.slane %v1696_v57, 1 }
 0x40b   : > { %v1724_v11 = vrot.slane %v1723_v7, 1 }
 0x40c   : > { %v1625_v19 = vpop.permute.xlu1 %1624  ;;  %v1703_v32 = vadd.f32 %v1702_v46, %v1701_v40  ;;  %v1698_v3 = vadd.f32 %v1697_v63, %v1696_v57 }
 0x40d   : > { %v1658_v16 = vmul.f32 %v2073_v0, %v1625_v19  ;;  %v1725_v33 = vadd.f32 %v1724_v11, %v1723_v7  ;;  %v2076_v19 = vld [vmem:[%s2262_s8 + $0x38] sm:$0xff]  ;;  %v2077_v0 = vld [vmem:[%s2262_s8 + $0x30] sm:$0xff] }
 0x40e   : > { %v1704_v29 = vrot.slane %v1703_v32, 2  ;;  %v1761_v20 = vsel %vm412_vm5, %v1698_v3, %v1760_v1  ;;  %vm1770_vm5 = vcmask 654336  }
 0x40f   : > { %v1709_v60 = vsel %vm3234_vm8, %v1658_v16, 0.0  ;;  %v1509_v16 = vmul.f32 %v2077_v0, %v3106_v38 }
 0x410   : > { %v1710_v10 = vadd.f32 %v1709_v60, %v1708_v58  ;;  %v1705_v62 = vadd.f32 %v1704_v29, %v1703_v32  ;;  %v1510_v32 = vmul.f32 %v2076_v19, %v3108_v35 }
 0x411   : > { %v1553_v15 = vsel %vm265_vm1, %v1509_v16, 0.0 }
 0x412   : > { %v1711_v4 = vrot.slane %v1710_v10, 4  ;;  %v1706_v13 = vrot.slane %v1705_v62, 1  ;;  %v1560_v53 = vsel %vm265_vm1, %v1510_v32, 0.0  ;;  %v1554_v47 = vrot.slane %v1553_v15, 4 }
 0x413   : > { %v1561_v58 = vrot.slane %v1560_v53, 4 }
 0x414   : > { %v1712_v24 = vadd.f32 %v1711_v4, %v1710_v10  ;;  %v1640_v41 = vpop.permute.xlu1 %1639  ;;  %v1707_v55 = vadd.f32 %v1706_v13, %v1705_v62  ;;  %v1555_v60 = vadd.f32 %v1554_v47, %v1553_v15 }
 0x415   : > { %v1661_v17 = vmul.f32 %v2075_v51, %v1640_v41  ;;  %v1562_v39 = vadd.f32 %v1561_v58, %v1560_v53 }
 0x416   : > { %v1713_v25 = vrot.slane %v1712_v24, 2  ;;  %v1762_v8 = vsel %vm414_vm6, %v1707_v55, %v1761_v20  ;;  %v1556_v59 = vrot.slane %v1555_v60, 2  ;;  %vm3241_vm6 = vmmov %vm3239_vm2 }
 0x417   : > { %v1726_v61 = vsel %vm3236_vm14, %v1661_v17, 0.0  ;;  %v1563_v28 = vrot.slane %v1562_v39, 2 }
 0x418   : > { %v1714_v45 = vadd.f32 %v1713_v25, %v1712_v24  ;;  %v1728_v6 = vadd.f32 %v1727_v21, %v1726_v61  ;;  %v1557_v29 = vadd.f32 %v1556_v59, %v1555_v60 }
 0x419   : > { %v1564_v10 = vadd.f32 %v1563_v28, %v1562_v39 }
 0x41a   : > { %v1715_v50 = vrot.slane %v1714_v45, 1  ;;  %v1729_v31 = vrot.slane %v1728_v6, 4  ;;  %v1558_v35 = vrot.slane %v1557_v29, 1 }
 0x41b   : > { %v1565_v12 = vrot.slane %v1564_v10, 1 }
 0x41c   : > { %v1730_v14 = vadd.f32 %v1729_v31, %v1728_v6  ;;  %v1716_v42 = vadd.f32 %v1715_v50, %v1714_v45  ;;  %v1559_v56 = vadd.f32 %v1558_v35, %v1557_v29 }
 0x41d   : > { %v1566_v38 = vadd.f32 %v1565_v12, %v1564_v10 }
 0x41e   : > { %v1731_v22 = vrot.slane %v1730_v14, 2  ;;  %v1763_v44 = vsel %vm3237_vm3, %v1716_v42, %v1762_v8  ;;  %v1748_v4 = vsel %vm3240_vm4, %v1559_v56, %v3104_v36 }
 0x41f   : > { %v1764_v54 = vsel %vm3238_vm10, %v1725_v33, %v1763_v44  ;;  %v1749_v9 = vsel %vm3241_vm6, %v1566_v38, %v1748_v4 }
 0x420   : > { %v1732_v40 = vadd.f32 %v1731_v22, %v1730_v14 }
 0x422   : > { %v1733_v46 = vrot.slane %v1732_v40, 1 }
 0x424   : > { %v1734_v18 = vadd.f32 %v1733_v46, %v1732_v40 }
 0x426   : > { %v1765_v49 = vsel %vm3239_vm2, %v1734_v18, %v1764_v54 }
 0x427   : > { %1766 = vrot.lane.b32.xlu2 %v1765_v49, %s2146_s22 }
 0x481   : > { %v1767_v26 = vpop.permute.xlu2 %1766 }
 0x482   : > { %v1769_v27 = vsel %vm265_vm1, %v1749_v9, %v1767_v26 }
 0x483   : > { %1771 = vst.msk [vmem:[%s222_s29] sm:$0xff] %vm1770_vm5, %v1769_v27 }
 0x484   : > { %2105 = shalt.err (!%p2102_p4)
}
 0x485   : > { %1923 = dma.vmem_to_hbm [thread:$0]  (%p2210_p5), %s1786_s30, 128, %s1788_s5, %s1773_s6  }
 0x486 PF: > { %p1929_p7 = scmp.ge.s32.totalorder %s2140_s18, 2  ;;  %s1799_s20 = sand.u32 1, %s2128_s15  }
 0x487   : > { %s1800_s22 = scalar_lea.sflag [#allocation3], %s1799_s20 }
 0x488   : > { %p1926_p8 = pnand %p1929_p7, %p2214_p6 }
 0x48a   : > { %p1927_p9 = pneg %p1926_p8 }
 0x48c   : > { %2123 = dma.done.wait (%p1927_p9), %s1800_s22, 128  }
 0x48d   : > { %2125 = vsyncadd (%p1927_p9), %s1800_s22, 4294967168  ;;  %p14_p10 = scmp.ge.s32.totalorder %s2197_s21, 4   ;;  %s3242_s15 = smov %s2132_s16 }
 0x48e   : > { %s3243_s16 = smov %s2136_s17  ;;  %s3244_s17 = smov %s2208_s24 }
 0x48f   : > { %s3245_s18 = smov %s2197_s21  ;;  %16 = sbr.rel (!%p14_p10) target bundleno = 3 (0x3), region = 80 }
 0x494   :  { %1806 = vsyncpa [#allocation3], 1 }
 0x495   :  { %1808 = vsyncpa [#allocation3 + $0x1], 1 }

</bundles_post_ra>
